<compile_context>
chip_gen: v5e
topology: v5e:2x2
jax: 0.10.0
libtpu: 0.0.40
codegen_flags: <defaults>
</compile_context>

<pallas_src>
import math

import jax
import jax.numpy as jnp
from jax import lax
from jax.experimental import pallas as pl
from jax.experimental.pallas import tpu as pltpu

# ----------------------------- model hyper-params -----------------------------
NODE_DIM = 32          # dim_in == dim_q == dim_k
EDGE_DIM = 8
N_HEADS = 4
FFN_DIM = 64
MAX_PATH = 5           # max_path_distance
N_NODES = 32           # total nodes in the packed graph batch (4 graphs x 8)
N_EDGES = 48
LN_EPS = 1e-5

HD = N_HEADS * NODE_DIM        # 128 (lane-dense)
H3D = 3 * HD                   # 384 (3x128, lane-dense)


def _mm(a, b):
    return jnp.dot(a, b, preferred_element_type=jnp.float32)


def _mm_nt(a, b):
    # a @ b.T without materializing the transpose (MXU handles the NT form).
    return lax.dot_general(a, b, (((1,), (1,)), ((), ())),
                           preferred_element_type=jnp.float32)


def _layer_norm(x, gamma, beta):
    mu = jnp.mean(x, axis=-1, keepdims=True)
    var = jnp.mean((x - mu) ** 2, axis=-1, keepdims=True)
    return (x - mu) * lax.rsqrt(var + LN_EPS) * gamma + beta


# ---------------------------------- kernel ------------------------------------
def graphormer_layer_kernel(
    x_ref,        # [N, D]      node features (whole packed graph batch)
    bias_ref,     # [N, N]      spatial encoding b + edge encoding c
    m01_ref,      # [N, N]      1.0 inside a graph block, 0.0 outside
    wqkv_ref,     # [D, 3*H*D]  fused Q|K|V weights (Q columns pre-scaled)
    wo_ref,       # [H*D, D]    fused output projection
    w1_ref,       # [D, F]      FFN layer 1
    w2_ref,       # [F, D]      FFN layer 2
    vec_ref,      # [8, 3*H*D]  packed biases / LayerNorm params
    out_ref,      # [N, D]
):
    x = x_ref[...]
    m01 = m01_ref[...]

    vec = vec_ref[...]
    bqkv = vec[0:1, :]                      # [1, 3*H*D]   (Q part pre-scaled)
    bo   = vec[1:2, :NODE_DIM]              # [1, D]
    b1   = vec[2:3, :FFN_DIM]               # [1, F]
    b2   = vec[3:4, :NODE_DIM]              # [1, D]
    g1   = vec[4:5, :NODE_DIM]
    be1  = vec[5:6, :NODE_DIM]
    g2   = vec[6:7, :NODE_DIM]
    be2  = vec[7:8, :NODE_DIM]

    # batch_mask_neg_inf of the reference: 1 inside a graph block, -1e6 outside.
    # compute_a gives a == 0 outside blocks, so (a+b+c)*mask == a*m01 + (b+c)*mask;
    # hoist the bias masking out of the per-head loop.
    m_mult = jnp.where(m01 > 0.0, 1.0, -1000000.0)
    bias_masked = bias_ref[...] * m_mult

    # h' = MHA(LN1(x)) + x
    xn = _layer_norm(x, g1, be1)

    # one fused QKV matmul: [N, D] x [D, 3*H*D] -> [N, 384]
    qkv = _mm(xn, wqkv_ref[...]) + bqkv

    heads = []
    for h in range(N_HEADS):                # unrolled per-head attention
        q = qkv[:, h * NODE_DIM:(h + 1) * NODE_DIM]                 # scale folded in
        k = qkv[:, HD + h * NODE_DIM:HD + (h + 1) * NODE_DIM]
        v = qkv[:, 2 * HD + h * NODE_DIM:2 * HD + (h + 1) * NODE_DIM]

        # compute_a: block-diagonal q k^T / sqrt(dq)   (scale already folded in)
        a = _mm_nt(q, k)
        s = a * m01 + bias_masked

        # softmax over last dim, then zero-mask (batch_mask_zeros)
        s = s - jnp.max(s, axis=-1, keepdims=True)
        e = jnp.exp(s)
        p = e * pl.reciprocal(jnp.sum(e, axis=-1, keepdims=True), approx=True)
        p = p * m01

        heads.append(_mm(p, v))                                       # [N, D]

    # concat-over-heads followed by Linear == [N, H*D=128] x [128, D] + bias
    heads_cat = jnp.concatenate(heads, axis=-1)                       # [N, 128]
    mha = _mm(heads_cat, wo_ref[...]) + bo

    x_prime = mha + x

    # h = FFN(LN2(h')) + h'
    x2 = _layer_norm(x_prime, g2, be2)
    h1 = _mm(x2, w1_ref[...]) + b1
    gelu = 0.5 * h1 * (1.0 + lax.erf(h1 * (1.0 / math.sqrt(2.0))))    # exact GELU
    ff = _mm(gelu, w2_ref[...]) + b2

    out_ref[...] = ff + x_prime


# ------------------------------- JAX glue code ---------------------------------
def edge_encoding(edge_vector, edge_attr, path_idx, path_len):
    """Dense equivalent of EdgeEncoding.forward.

    edge_vector: [P, E], edge_attr: [num_edges, E]
    path_idx:    [N, N, P] int32 edge indices (padded, only first path_len valid)
    path_len:    [N, N]    int32 path lengths (0 => no path => cij = 0)
    """
    # TODO(synk): the original edge_paths is a ragged python dict-of-dicts; the
    # gather below runs in plain JAX (no clean Pallas equivalent for ragged gather).
    gathered = jnp.take(edge_attr, path_idx, axis=0)                     # [N,N,P,E]
    dots = jnp.sum(edge_vector[None, None, :, :] * gathered, axis=-1)    # [N,N,P]
    pos = jnp.arange(MAX_PATH)[None, None, :]
    valid = pos < path_len[:, :, None]
    ssum = jnp.sum(jnp.where(valid, dots, 0.0), axis=-1)
    cij = jnp.where(path_len > 0,
                    ssum / jnp.maximum(path_len, 1).astype(jnp.float32), 0.0)
    return cij.astype(jnp.float32)        # torch.nan_to_num(mean of empty) == 0


def build_block_mask(n, ptr):
    """1.0 inside each graph's block, 0.0 elsewhere (all-ones if ptr is None)."""
    if ptr is None:
        return jnp.ones((n, n), jnp.float32)
    seg = jnp.zeros((n,), jnp.int32)
    for i in range(len(ptr) - 1):
        seg = seg.at[ptr[i]:ptr[i + 1]].set(i)
    return (seg[:, None] == seg[None, :]).astype(jnp.float32)


@jax.jit
def graphormer_encoder_layer(x, attn_bias, m01, wqkv, wo, w1, w2, vec):
    """x: [N, D]; attn_bias, m01: [N, N]; returns [N, D].

    Gridless pallas_call: every operand is a whole-array block resident in VMEM
    (total < 200 KB), so there is exactly one kernel invocation and one DMA per
    operand — no per-grid-step overhead and no re-fetch of weights.
    """
    n, d = x.shape
    return pl.pallas_call(
        graphormer_layer_kernel,
        out_shape=jax.ShapeDtypeStruct((n, d), jnp.float32),
    )(x, attn_bias, m01, wqkv, wo, w1, w2, vec)


def init_params(key):
    """Random per-head params fused into the packed layout the kernel expects."""
    ks = jax.random.split(key, 12)
    f32 = jnp.float32
    D, H, F = NODE_DIM, N_HEADS, FFN_DIM
    scale = 1.0 / math.sqrt(float(D))        # query.size(-1) ** 0.5

    wq = 0.1 * jax.random.normal(ks[0], (H, D, D), f32)
    bq = 0.1 * jax.random.normal(ks[1], (H, D), f32)
    wk = 0.1 * jax.random.normal(ks[2], (H, D, D), f32)
    bk = 0.1 * jax.random.normal(ks[3], (H, D), f32)
    wv = 0.1 * jax.random.normal(ks[4], (H, D, D), f32)
    bv = 0.1 * jax.random.normal(ks[5], (H, D), f32)
    wo_h = 0.1 * jax.random.normal(ks[6], (H, D, D), f32)
    bo = 0.1 * jax.random.normal(ks[7], (D,), f32)
    w1 = 0.1 * jax.random.normal(ks[8], (D, F), f32)
    b1 = 0.1 * jax.random.normal(ks[9], (F,), f32)
    w2 = 0.1 * jax.random.normal(ks[10], (F, D), f32)
    b2 = 0.1 * jax.random.normal(ks[11], (D,), f32)
    g1 = jnp.ones((D,), f32)
    be1 = jnp.zeros((D,), f32)
    g2 = jnp.ones((D,), f32)
    be2 = jnp.zeros((D,), f32)

    # fused QKV weight [D, 3*H*D]; 1/sqrt(dq) folded into the Q columns / bias
    q_blk = jnp.concatenate([wq[h] * scale for h in range(H)], axis=1)   # [D, H*D]
    k_blk = jnp.concatenate([wk[h] for h in range(H)], axis=1)
    v_blk = jnp.concatenate([wv[h] for h in range(H)], axis=1)
    wqkv = jnp.concatenate([q_blk, k_blk, v_blk], axis=1)                # [D, 3*H*D]
    bqkv = jnp.concatenate([(bq * scale).reshape(-1), bk.reshape(-1), bv.reshape(-1)])

    # fused output projection: concat(heads) @ wo  ==  sum_h head_h @ wo_h
    wo = jnp.concatenate([wo_h[h] for h in range(H)], axis=0)            # [H*D, D]

    # pack all 1-D parameters into a single [8, 3*H*D] array (one DMA)
    vec = jnp.zeros((8, 3 * H * D), f32)
    vec = vec.at[0, :].set(bqkv)
    vec = vec.at[1, :D].set(bo)
    vec = vec.at[2, :F].set(b1)
    vec = vec.at[3, :D].set(b2)
    vec = vec.at[4, :D].set(g1)
    vec = vec.at[5, :D].set(be1)
    vec = vec.at[6, :D].set(g2)
    vec = vec.at[7, :D].set(be2)
    return wqkv, wo, w1, w2, vec


if __name__ == "__main__":
    key = jax.random.PRNGKey(0)
    k_x, k_ea, k_b, k_ev, k_pi, k_plen, k_par = jax.random.split(key, 7)

    # one packed graph batch: 4 graphs of 8 nodes each
    x = jax.random.normal(k_x, (N_NODES, NODE_DIM), jnp.float32)
    edge_attr = jax.random.normal(k_ea, (N_EDGES, EDGE_DIM), jnp.float32)
    b = 0.1 * jax.random.normal(k_b, (N_NODES, N_NODES), jnp.float32)  # spatial encoding
    edge_vector = jax.random.normal(k_ev, (MAX_PATH, EDGE_DIM), jnp.float32)

    # densified edge_paths: path_idx[src, dst, :path_len[src, dst]] are edge indices
    path_idx = jax.random.randint(k_pi, (N_NODES, N_NODES, MAX_PATH), 0, N_EDGES, jnp.int32)
    path_len = jax.random.randint(k_plen, (N_NODES, N_NODES), 0, MAX_PATH + 1, jnp.int32)

    # batch pointer (graph boundaries inside the packed node axis)
    ptr = [0, 8, 16, 24, 32]

    # glue: edge encoding + block mask + (b + c) fusion (fewer kernel inputs)
    c = edge_encoding(edge_vector, edge_attr, path_idx, path_len)
    m01 = build_block_mask(N_NODES, ptr)
    attn_bias = b + c

    wqkv, wo, w1, w2, vec = init_params(k_par)

    out = graphormer_encoder_layer(x, attn_bias, m01, wqkv, wo, w1, w2, vec)
    out = jax.block_until_ready(out)
    assert out.shape == (N_NODES, NODE_DIM) and out.dtype == jnp.float32
    assert bool(jnp.all(jnp.isfinite(out)))
    print("KERNEL_OK")
</pallas_src>

<mosaic_0001>
module attributes {stable_mosaic.version = 11 : i64} {
  func.func @graphormer_layer_kernel(%arg0: memref<32x32xf32, #tpu.memory_space<vmem>>, %arg1: memref<32x32xf32, #tpu.memory_space<vmem>>, %arg2: memref<32x32xf32, #tpu.memory_space<vmem>>, %arg3: memref<32x384xf32, #tpu.memory_space<vmem>>, %arg4: memref<128x32xf32, #tpu.memory_space<vmem>>, %arg5: memref<32x64xf32, #tpu.memory_space<vmem>>, %arg6: memref<64x32xf32, #tpu.memory_space<vmem>>, %arg7: memref<8x384xf32, #tpu.memory_space<vmem>>, %arg8: memref<32x32xf32, #tpu.memory_space<vmem>>) attributes {dimension_semantics = [], scalar_prefetch = 0 : i64, scratch_operands = 0 : i64, tpu.core_type = #tpu.core_type<tc>} {
    %c0 = arith.constant 0 : index
    %c0_0 = arith.constant 0 : index
    %0 = vector.load %arg0[%c0, %c0_0] : memref<32x32xf32, #tpu.memory_space<vmem>>, vector<32x32xf32>
    %c0_1 = arith.constant 0 : index
    %c0_2 = arith.constant 0 : index
    %1 = vector.load %arg2[%c0_1, %c0_2] : memref<32x32xf32, #tpu.memory_space<vmem>>, vector<32x32xf32>
    %c0_3 = arith.constant 0 : index
    %c0_4 = arith.constant 0 : index
    %2 = vector.load %arg7[%c0_3, %c0_4] : memref<8x384xf32, #tpu.memory_space<vmem>>, vector<8x384xf32>
    %3 = vector.extract_strided_slice %2 {offsets = [0, 0], sizes = [1, 384], strides = [1, 1]} : vector<8x384xf32> to vector<1x384xf32>
    %4 = vector.extract_strided_slice %2 {offsets = [1, 0], sizes = [1, 32], strides = [1, 1]} : vector<8x384xf32> to vector<1x32xf32>
    %5 = vector.extract_strided_slice %2 {offsets = [2, 0], sizes = [1, 64], strides = [1, 1]} : vector<8x384xf32> to vector<1x64xf32>
    %6 = vector.extract_strided_slice %2 {offsets = [3, 0], sizes = [1, 32], strides = [1, 1]} : vector<8x384xf32> to vector<1x32xf32>
    %7 = vector.extract_strided_slice %2 {offsets = [4, 0], sizes = [1, 32], strides = [1, 1]} : vector<8x384xf32> to vector<1x32xf32>
    %8 = vector.extract_strided_slice %2 {offsets = [5, 0], sizes = [1, 32], strides = [1, 1]} : vector<8x384xf32> to vector<1x32xf32>
    %9 = vector.extract_strided_slice %2 {offsets = [6, 0], sizes = [1, 32], strides = [1, 1]} : vector<8x384xf32> to vector<1x32xf32>
    %10 = vector.extract_strided_slice %2 {offsets = [7, 0], sizes = [1, 32], strides = [1, 1]} : vector<8x384xf32> to vector<1x32xf32>
    %cst = arith.constant 0.000000e+00 : f32
    %11 = vector.broadcast %cst : f32 to vector<32x32xf32>
    %12 = arith.cmpf ogt, %1, %11 : vector<32x32xf32>
    %cst_5 = arith.constant 1.000000e+00 : f32
    %cst_6 = arith.constant -1.000000e+06 : f32
    %13 = vector.broadcast %cst_5 : f32 to vector<32x32xf32>
    %14 = vector.broadcast %cst_6 : f32 to vector<32x32xf32>
    %15 = arith.select %12, %13, %14 : vector<32x32xi1>, vector<32x32xf32>
    %c0_7 = arith.constant 0 : index
    %c0_8 = arith.constant 0 : index
    %16 = vector.load %arg1[%c0_7, %c0_8] : memref<32x32xf32, #tpu.memory_space<vmem>>, vector<32x32xf32>
    %17 = arith.mulf %16, %15 : vector<32x32xf32>
    %cst_9 = arith.constant dense<0.000000e+00> : vector<32xf32>
    %18 = vector.multi_reduction <add>, %0, %cst_9 [1] : vector<32x32xf32> to vector<32xf32>
    %19 = vector.shape_cast %18 : vector<32xf32> to vector<32x1xf32>
    %cst_10 = arith.constant 3.200000e+01 : f32
    %20 = vector.broadcast %cst_10 : f32 to vector<32x1xf32>
    %21 = arith.divf %19, %20 : vector<32x1xf32>
    %22 = vector.broadcast %21 : vector<32x1xf32> to vector<32x32xf32>
    %23 = arith.subf %0, %22 : vector<32x32xf32>
    %24 = arith.mulf %23, %23 : vector<32x32xf32>
    %cst_11 = arith.constant dense<0.000000e+00> : vector<32xf32>
    %25 = vector.multi_reduction <add>, %24, %cst_11 [1] : vector<32x32xf32> to vector<32xf32>
    %26 = vector.shape_cast %25 : vector<32xf32> to vector<32x1xf32>
    %cst_12 = arith.constant 3.200000e+01 : f32
    %27 = vector.broadcast %cst_12 : f32 to vector<32x1xf32>
    %28 = arith.divf %26, %27 : vector<32x1xf32>
    %29 = vector.broadcast %21 : vector<32x1xf32> to vector<32x32xf32>
    %30 = arith.subf %0, %29 : vector<32x32xf32>
    %cst_13 = arith.constant 9.99999974E-6 : f32
    %31 = vector.broadcast %cst_13 : f32 to vector<32x1xf32>
    %32 = arith.addf %28, %31 : vector<32x1xf32>
    %33 = math.rsqrt %32 : vector<32x1xf32>
    %34 = vector.broadcast %33 : vector<32x1xf32> to vector<32x32xf32>
    %35 = arith.mulf %30, %34 : vector<32x32xf32>
    %36 = vector.broadcast %7 : vector<1x32xf32> to vector<32x32xf32>
    %37 = arith.mulf %35, %36 : vector<32x32xf32>
    %38 = vector.broadcast %8 : vector<1x32xf32> to vector<32x32xf32>
    %39 = arith.addf %37, %38 : vector<32x32xf32>
    %c0_14 = arith.constant 0 : index
    %c0_15 = arith.constant 0 : index
    %40 = vector.load %arg3[%c0_14, %c0_15] : memref<32x384xf32, #tpu.memory_space<vmem>>, vector<32x384xf32>
    %cst_16 = arith.constant dense<0.000000e+00> : vector<32x384xf32>
    %41 = tpu.matmul %39, %40, %cst_16 {dimension_numbers = #tpu.dot_dimension_numbers<[1], [0], [0], [1], [0, 0, 1, 1], [], []>} : vector<32x32xf32>, vector<32x384xf32>, vector<32x384xf32> -> vector<32x384xf32>
    %42 = vector.broadcast %3 : vector<1x384xf32> to vector<32x384xf32>
    %43 = arith.addf %41, %42 : vector<32x384xf32>
    %44 = vector.extract_strided_slice %43 {offsets = [0, 0], sizes = [32, 32], strides = [1, 1]} : vector<32x384xf32> to vector<32x32xf32>
    %45 = vector.extract_strided_slice %43 {offsets = [0, 128], sizes = [32, 32], strides = [1, 1]} : vector<32x384xf32> to vector<32x32xf32>
    %46 = vector.extract_strided_slice %43 {offsets = [0, 256], sizes = [32, 32], strides = [1, 1]} : vector<32x384xf32> to vector<32x32xf32>
    %cst_17 = arith.constant dense<0.000000e+00> : vector<32x32xf32>
    %47 = tpu.matmul %44, %45, %cst_17 {dimension_numbers = #tpu.dot_dimension_numbers<[1], [1], [0], [0], [0, 0, 1, 0], [], []>} : vector<32x32xf32>, vector<32x32xf32>, vector<32x32xf32> -> vector<32x32xf32>
    %48 = arith.mulf %47, %1 : vector<32x32xf32>
    %49 = arith.addf %48, %17 : vector<32x32xf32>
    %cst_18 = arith.constant dense<0xFF800000> : vector<32xf32>
    %50 = vector.multi_reduction <maximumf>, %49, %cst_18 [1] : vector<32x32xf32> to vector<32xf32>
    %51 = vector.shape_cast %50 : vector<32xf32> to vector<32x1xf32>
    %52 = vector.broadcast %51 : vector<32x1xf32> to vector<32x32xf32>
    %53 = arith.subf %49, %52 : vector<32x32xf32>
    %54 = math.exp %53 : vector<32x32xf32>
    %cst_19 = arith.constant dense<0.000000e+00> : vector<32xf32>
    %55 = vector.multi_reduction <add>, %54, %cst_19 [1] : vector<32x32xf32> to vector<32xf32>
    %56 = vector.shape_cast %55 : vector<32xf32> to vector<32x1xf32>
    %57 = tpu.reciprocal %56 {approx = true} : vector<32x1xf32> -> vector<32x1xf32>
    %58 = vector.broadcast %57 : vector<32x1xf32> to vector<32x32xf32>
    %59 = arith.mulf %54, %58 : vector<32x32xf32>
    %60 = arith.mulf %59, %1 : vector<32x32xf32>
    %cst_20 = arith.constant dense<0.000000e+00> : vector<32x32xf32>
    %61 = tpu.matmul %60, %46, %cst_20 {dimension_numbers = #tpu.dot_dimension_numbers<[1], [0], [0], [1], [0, 0, 1, 1], [], []>} : vector<32x32xf32>, vector<32x32xf32>, vector<32x32xf32> -> vector<32x32xf32>
    %62 = vector.extract_strided_slice %43 {offsets = [0, 32], sizes = [32, 32], strides = [1, 1]} : vector<32x384xf32> to vector<32x32xf32>
    %63 = vector.extract_strided_slice %43 {offsets = [0, 160], sizes = [32, 32], strides = [1, 1]} : vector<32x384xf32> to vector<32x32xf32>
    %64 = vector.extract_strided_slice %43 {offsets = [0, 288], sizes = [32, 32], strides = [1, 1]} : vector<32x384xf32> to vector<32x32xf32>
    %cst_21 = arith.constant dense<0.000000e+00> : vector<32x32xf32>
    %65 = tpu.matmul %62, %63, %cst_21 {dimension_numbers = #tpu.dot_dimension_numbers<[1], [1], [0], [0], [0, 0, 1, 0], [], []>} : vector<32x32xf32>, vector<32x32xf32>, vector<32x32xf32> -> vector<32x32xf32>
    %66 = arith.mulf %65, %1 : vector<32x32xf32>
    %67 = arith.addf %66, %17 : vector<32x32xf32>
    %cst_22 = arith.constant dense<0xFF800000> : vector<32xf32>
    %68 = vector.multi_reduction <maximumf>, %67, %cst_22 [1] : vector<32x32xf32> to vector<32xf32>
    %69 = vector.shape_cast %68 : vector<32xf32> to vector<32x1xf32>
    %70 = vector.broadcast %69 : vector<32x1xf32> to vector<32x32xf32>
    %71 = arith.subf %67, %70 : vector<32x32xf32>
    %72 = math.exp %71 : vector<32x32xf32>
    %cst_23 = arith.constant dense<0.000000e+00> : vector<32xf32>
    %73 = vector.multi_reduction <add>, %72, %cst_23 [1] : vector<32x32xf32> to vector<32xf32>
    %74 = vector.shape_cast %73 : vector<32xf32> to vector<32x1xf32>
    %75 = tpu.reciprocal %74 {approx = true} : vector<32x1xf32> -> vector<32x1xf32>
    %76 = vector.broadcast %75 : vector<32x1xf32> to vector<32x32xf32>
    %77 = arith.mulf %72, %76 : vector<32x32xf32>
    %78 = arith.mulf %77, %1 : vector<32x32xf32>
    %cst_24 = arith.constant dense<0.000000e+00> : vector<32x32xf32>
    %79 = tpu.matmul %78, %64, %cst_24 {dimension_numbers = #tpu.dot_dimension_numbers<[1], [0], [0], [1], [0, 0, 1, 1], [], []>} : vector<32x32xf32>, vector<32x32xf32>, vector<32x32xf32> -> vector<32x32xf32>
    %80 = vector.extract_strided_slice %43 {offsets = [0, 64], sizes = [32, 32], strides = [1, 1]} : vector<32x384xf32> to vector<32x32xf32>
    %81 = vector.extract_strided_slice %43 {offsets = [0, 192], sizes = [32, 32], strides = [1, 1]} : vector<32x384xf32> to vector<32x32xf32>
    %82 = vector.extract_strided_slice %43 {offsets = [0, 320], sizes = [32, 32], strides = [1, 1]} : vector<32x384xf32> to vector<32x32xf32>
    %cst_25 = arith.constant dense<0.000000e+00> : vector<32x32xf32>
    %83 = tpu.matmul %80, %81, %cst_25 {dimension_numbers = #tpu.dot_dimension_numbers<[1], [1], [0], [0], [0, 0, 1, 0], [], []>} : vector<32x32xf32>, vector<32x32xf32>, vector<32x32xf32> -> vector<32x32xf32>
    %84 = arith.mulf %83, %1 : vector<32x32xf32>
    %85 = arith.addf %84, %17 : vector<32x32xf32>
    %cst_26 = arith.constant dense<0xFF800000> : vector<32xf32>
    %86 = vector.multi_reduction <maximumf>, %85, %cst_26 [1] : vector<32x32xf32> to vector<32xf32>
    %87 = vector.shape_cast %86 : vector<32xf32> to vector<32x1xf32>
    %88 = vector.broadcast %87 : vector<32x1xf32> to vector<32x32xf32>
    %89 = arith.subf %85, %88 : vector<32x32xf32>
    %90 = math.exp %89 : vector<32x32xf32>
    %cst_27 = arith.constant dense<0.000000e+00> : vector<32xf32>
    %91 = vector.multi_reduction <add>, %90, %cst_27 [1] : vector<32x32xf32> to vector<32xf32>
    %92 = vector.shape_cast %91 : vector<32xf32> to vector<32x1xf32>
    %93 = tpu.reciprocal %92 {approx = true} : vector<32x1xf32> -> vector<32x1xf32>
    %94 = vector.broadcast %93 : vector<32x1xf32> to vector<32x32xf32>
    %95 = arith.mulf %90, %94 : vector<32x32xf32>
    %96 = arith.mulf %95, %1 : vector<32x32xf32>
    %cst_28 = arith.constant dense<0.000000e+00> : vector<32x32xf32>
    %97 = tpu.matmul %96, %82, %cst_28 {dimension_numbers = #tpu.dot_dimension_numbers<[1], [0], [0], [1], [0, 0, 1, 1], [], []>} : vector<32x32xf32>, vector<32x32xf32>, vector<32x32xf32> -> vector<32x32xf32>
    %98 = vector.extract_strided_slice %43 {offsets = [0, 96], sizes = [32, 32], strides = [1, 1]} : vector<32x384xf32> to vector<32x32xf32>
    %99 = vector.extract_strided_slice %43 {offsets = [0, 224], sizes = [32, 32], strides = [1, 1]} : vector<32x384xf32> to vector<32x32xf32>
    %100 = vector.extract_strided_slice %43 {offsets = [0, 352], sizes = [32, 32], strides = [1, 1]} : vector<32x384xf32> to vector<32x32xf32>
    %cst_29 = arith.constant dense<0.000000e+00> : vector<32x32xf32>
    %101 = tpu.matmul %98, %99, %cst_29 {dimension_numbers = #tpu.dot_dimension_numbers<[1], [1], [0], [0], [0, 0, 1, 0], [], []>} : vector<32x32xf32>, vector<32x32xf32>, vector<32x32xf32> -> vector<32x32xf32>
    %102 = arith.mulf %101, %1 : vector<32x32xf32>
    %103 = arith.addf %102, %17 : vector<32x32xf32>
    %cst_30 = arith.constant dense<0xFF800000> : vector<32xf32>
    %104 = vector.multi_reduction <maximumf>, %103, %cst_30 [1] : vector<32x32xf32> to vector<32xf32>
    %105 = vector.shape_cast %104 : vector<32xf32> to vector<32x1xf32>
    %106 = vector.broadcast %105 : vector<32x1xf32> to vector<32x32xf32>
    %107 = arith.subf %103, %106 : vector<32x32xf32>
    %108 = math.exp %107 : vector<32x32xf32>
    %cst_31 = arith.constant dense<0.000000e+00> : vector<32xf32>
    %109 = vector.multi_reduction <add>, %108, %cst_31 [1] : vector<32x32xf32> to vector<32xf32>
    %110 = vector.shape_cast %109 : vector<32xf32> to vector<32x1xf32>
    %111 = tpu.reciprocal %110 {approx = true} : vector<32x1xf32> -> vector<32x1xf32>
    %112 = vector.broadcast %111 : vector<32x1xf32> to vector<32x32xf32>
    %113 = arith.mulf %108, %112 : vector<32x32xf32>
    %114 = arith.mulf %113, %1 : vector<32x32xf32>
    %cst_32 = arith.constant dense<0.000000e+00> : vector<32x32xf32>
    %115 = tpu.matmul %114, %100, %cst_32 {dimension_numbers = #tpu.dot_dimension_numbers<[1], [0], [0], [1], [0, 0, 1, 1], [], []>} : vector<32x32xf32>, vector<32x32xf32>, vector<32x32xf32> -> vector<32x32xf32>
    %116 = tpu.concatenate %61, %79, %97, %115 in 1 : vector<32x32xf32>, vector<32x32xf32>, vector<32x32xf32>, vector<32x32xf32> -> vector<32x128xf32>
    %c0_33 = arith.constant 0 : index
    %c0_34 = arith.constant 0 : index
    %117 = vector.load %arg4[%c0_33, %c0_34] : memref<128x32xf32, #tpu.memory_space<vmem>>, vector<128x32xf32>
    %cst_35 = arith.constant dense<0.000000e+00> : vector<32x32xf32>
    %118 = tpu.matmul %116, %117, %cst_35 {dimension_numbers = #tpu.dot_dimension_numbers<[1], [0], [0], [1], [0, 0, 1, 1], [], []>} : vector<32x128xf32>, vector<128x32xf32>, vector<32x32xf32> -> vector<32x32xf32>
    %119 = vector.broadcast %4 : vector<1x32xf32> to vector<32x32xf32>
    %120 = arith.addf %118, %119 : vector<32x32xf32>
    %121 = arith.addf %120, %0 : vector<32x32xf32>
    %cst_36 = arith.constant dense<0.000000e+00> : vector<32xf32>
    %122 = vector.multi_reduction <add>, %121, %cst_36 [1] : vector<32x32xf32> to vector<32xf32>
    %123 = vector.shape_cast %122 : vector<32xf32> to vector<32x1xf32>
    %cst_37 = arith.constant 3.200000e+01 : f32
    %124 = vector.broadcast %cst_37 : f32 to vector<32x1xf32>
    %125 = arith.divf %123, %124 : vector<32x1xf32>
    %126 = vector.broadcast %125 : vector<32x1xf32> to vector<32x32xf32>
    %127 = arith.subf %121, %126 : vector<32x32xf32>
    %128 = arith.mulf %127, %127 : vector<32x32xf32>
    %cst_38 = arith.constant dense<0.000000e+00> : vector<32xf32>
    %129 = vector.multi_reduction <add>, %128, %cst_38 [1] : vector<32x32xf32> to vector<32xf32>
    %130 = vector.shape_cast %129 : vector<32xf32> to vector<32x1xf32>
    %cst_39 = arith.constant 3.200000e+01 : f32
    %131 = vector.broadcast %cst_39 : f32 to vector<32x1xf32>
    %132 = arith.divf %130, %131 : vector<32x1xf32>
    %133 = vector.broadcast %125 : vector<32x1xf32> to vector<32x32xf32>
    %134 = arith.subf %121, %133 : vector<32x32xf32>
    %cst_40 = arith.constant 9.99999974E-6 : f32
    %135 = vector.broadcast %cst_40 : f32 to vector<32x1xf32>
    %136 = arith.addf %132, %135 : vector<32x1xf32>
    %137 = math.rsqrt %136 : vector<32x1xf32>
    %138 = vector.broadcast %137 : vector<32x1xf32> to vector<32x32xf32>
    %139 = arith.mulf %134, %138 : vector<32x32xf32>
    %140 = vector.broadcast %9 : vector<1x32xf32> to vector<32x32xf32>
    %141 = arith.mulf %139, %140 : vector<32x32xf32>
    %142 = vector.broadcast %10 : vector<1x32xf32> to vector<32x32xf32>
    %143 = arith.addf %141, %142 : vector<32x32xf32>
    %c0_41 = arith.constant 0 : index
    %c0_42 = arith.constant 0 : index
    %144 = vector.load %arg5[%c0_41, %c0_42] : memref<32x64xf32, #tpu.memory_space<vmem>>, vector<32x64xf32>
    %cst_43 = arith.constant dense<0.000000e+00> : vector<32x64xf32>
    %145 = tpu.matmul %143, %144, %cst_43 {dimension_numbers = #tpu.dot_dimension_numbers<[1], [0], [0], [1], [0, 0, 1, 1], [], []>} : vector<32x32xf32>, vector<32x64xf32>, vector<32x64xf32> -> vector<32x64xf32>
    %146 = vector.broadcast %5 : vector<1x64xf32> to vector<32x64xf32>
    %147 = arith.addf %145, %146 : vector<32x64xf32>
    %cst_44 = arith.constant 5.000000e-01 : f32
    %148 = vector.broadcast %cst_44 : f32 to vector<32x64xf32>
    %149 = arith.mulf %148, %147 : vector<32x64xf32>
    %cst_45 = arith.constant 0.707106769 : f32
    %150 = vector.broadcast %cst_45 : f32 to vector<32x64xf32>
    %151 = arith.mulf %147, %150 : vector<32x64xf32>
    %152 = math.erf %151 : vector<32x64xf32>
    %cst_46 = arith.constant 1.000000e+00 : f32
    %153 = vector.broadcast %cst_46 : f32 to vector<32x64xf32>
    %154 = arith.addf %153, %152 : vector<32x64xf32>
    %155 = arith.mulf %149, %154 : vector<32x64xf32>
    %c0_47 = arith.constant 0 : index
    %c0_48 = arith.constant 0 : index
    %156 = vector.load %arg6[%c0_47, %c0_48] : memref<64x32xf32, #tpu.memory_space<vmem>>, vector<64x32xf32>
    %cst_49 = arith.constant dense<0.000000e+00> : vector<32x32xf32>
    %157 = tpu.matmul %155, %156, %cst_49 {dimension_numbers = #tpu.dot_dimension_numbers<[1], [0], [0], [1], [0, 0, 1, 1], [], []>} : vector<32x64xf32>, vector<64x32xf32>, vector<32x32xf32> -> vector<32x32xf32>
    %158 = vector.broadcast %6 : vector<1x32xf32> to vector<32x32xf32>
    %159 = arith.addf %157, %158 : vector<32x32xf32>
    %160 = arith.addf %159, %121 : vector<32x32xf32>
    %c0_50 = arith.constant 0 : index
    %c0_51 = arith.constant 0 : index
    %161 = vector.load %arg8[%c0_50, %c0_51] : memref<32x32xf32, #tpu.memory_space<vmem>>, vector<32x32xf32>
    tpu.vector_store %arg8[%c0_50, %c0_51], %160 {strides = array<i32>} : memref<32x32xf32, #tpu.memory_space<vmem>>, vector<32x32xf32>,
    return
  }
}

</mosaic_0001>

<bundles_post_ra>
// kernel: graphormer_encoder_layer.1
= control target key start
LH: loop header
LB: loop body
LE: loop exit
PB: predicated region body
PF: predicated region fallthrough
CT: control target
= control target key end

     0   :  { %13 = vsyncpa [#allocation3], 0  ;;  %s2499_s0 = inlined_call_operand.vmem [shape: f32[32,32], index: 0, kind: input, shape index: {}]   ;;  %s2500_s1 = inlined_call_operand.vmem [shape: f32[32,32], index: 1, kind: input, shape index: {}]   ;;  %s2501_s2 = inlined_call_operand.vmem [shape: f32[32,32], index: 2, kind: input, shape index: {}]   ;;  %s2502_s3 = inlined_call_operand.vmem [shape: f32[32,384], index: 3, kind: input, shape index: {}]   ;;  %s2503_s4 = inlined_call_operand.vmem [shape: f32[128,32], index: 4, kind: input, shape index: {}]   ;;  %s2504_s5 = inlined_call_operand.vmem [shape: f32[32,64], index: 5, kind: input, shape index: {}]   ;;  %s2505_s6 = inlined_call_operand.vmem [shape: f32[64,32], index: 6, kind: input, shape index: {}]   ;;  %s2506_s7 = inlined_call_operand.hbm [shape: f32[8,384], index: 7, kind: input, shape index: {}]   ;;  %s2507_s8 = inlined_call_operand.hbm [shape: f32[32,32], index: 8, kind: output, shape index: {}]  }
   0x1   :  { %14 = vsyncpa [#allocation4], 0  ;;  %s34_s29 = sshll.u32 %s2506_s7, 4  ;;  %s1735_s30 = smov [#allocation2]   ;;  %s35_s29 = int_to_ptr.hbm [resolvable:$true] %s34_s29 }
   0x2   :  { %s36_s9 = sshll.u32 %s1735_s30, 4  ;;  %s37_s9 = int_to_ptr.vmem [resolvable:$true] %s36_s9 }
   0x3   :  { %39 = dma.hbm_to_vmem [thread:$0]  %s35_s29, 384, %s37_s9, [#allocation3]  }
   0x4   :  { %1731 = dma.done.wait [#allocation3], 384  }
   0x5   :  { %1732 = vsyncadd [#allocation3], 4294966912  ;;  %vm71_vm0 = vcmask 261120   ;;  %v47_v0 = vld [vmem:[%s2499_s0 + $0x18] sm:$0xff]  ;;  %v46_v1 = vld [vmem:[%s2499_s0 + $0x10] sm:$0xff]  ;;  %v1736_v8 = vmov 32.0  }
   0x6   :  { %v81_v2 = vsel %vm71_vm0, %v47_v0, 0.0  ;;  %v78_v3 = vsel %vm71_vm0, %v46_v1, 0.0  ;;  %v45_v4 = vld [vmem:[%s2499_s0 + $0x8] sm:$0xff]  ;;  %v44_v5 = vld [vmem:[%s2499_s0] sm:$0xff]  ;;  %1588 = vrcp.f32 %v1736_v8  ;;  %v187_v36 = vld [vmem:[%s2502_s3 + $0x50] sm:$0xff]  ;;  %s1738_s18 = smov 32  }
   0x7   :  { %82 = vadd.xlane.f32.xlu1 %v81_v2  ;;  %79 = vadd.xlane.f32.xlu0 %v78_v3  ;;  %v75_v6 = vsel %vm71_vm0, %v45_v4, 0.0  ;;  %v72_v7 = vsel %vm71_vm0, %v44_v5, 0.0  ;;  %v186_v35 = vld [vmem:[%s2502_s3 + $0x48] sm:$0xff]  ;;  %v183_v37 = vld [vmem:[%s2502_s3 + $0x30] sm:$0xff]  ;;  %v184_v38 = vld [vmem:[%s2502_s3 + $0x38] sm:$0xff]  ;;  %s1739_s19 = smov 64  }
   0x8   :  { %1536 = vmatpush.msra.mxu3 %v186_v35  ;;  %1540 = vmatpush.msra.mxu1 %v187_v36  ;;  %v180_v39 = vld [vmem:[%s2502_s3 + $0x18] sm:$0xff]  ;;  %v181_v40 = vld [vmem:[%s2502_s3 + $0x20] sm:$0xff]  ;;  %v178_v42 = vld [vmem:[%s2502_s3 + $0x8] sm:$0xff]  ;;  %s1451_s24 = sshll.u32 %s2507_s8, 4  ;;  %s1742_s25 = smov 128   ;;  %s1452_s24 = int_to_ptr.hbm [resolvable:$true] %s1451_s24 }
   0x9   :  { %216 = vmatpush.msra.mxu2 %v186_v35  ;;  %245 = vmatpush.msra.mxu0 %v187_v36  ;;  %v177_v41 = vld [vmem:[%s2502_s3] sm:$0xff] }
   0xa   :  { %1537 = vmatpush.msra.mxu3 %v183_v37  ;;  %1541 = vmatpush.msra.mxu1 %v184_v38 }
   0xb   :  { %217 = vmatpush.msra.mxu2 %v183_v37  ;;  %246 = vmatpush.msra.mxu0 %v184_v38 }
   0xc   :  { %v1589_v9 = vpop.eup %1588  ;;  %1538 = vmatpush.msra.mxu3 %v180_v39  ;;  %1542 = vmatpush.msra.mxu1 %v181_v40 }
   0xd   :  { %v85_v10 = vmul.f32 32.0, %v1589_v9  ;;  %vm89_vm1 = vweird.f32 %v1589_v9  ;;  %218 = vmatpush.msra.mxu2 %v180_v39  ;;  %247 = vmatpush.msra.mxu0 %v181_v40 }
   0xe   :  { %1539 = vmatpush.msra.mxu3 %v177_v41  ;;  %1543 = vmatpush.msra.mxu1 %v178_v42 }
   0xf   :  { %76 = vadd.xlane.f32.xlu1 %v75_v6  ;;  %73 = vadd.xlane.f32.xlu0 %v72_v7  ;;  %v86_v11 = vsub.f32 1.0, %v85_v10 }
  0x10   :  { %219 = vmatpush.msra.mxu2 %v177_v41  ;;  %248 = vmatpush.msra.mxu0 %v178_v42 }
  0x11   :  { %v87_v12 = vmul.f32 %v1589_v9, %v86_v11  ;;  %v188_v11 = vld [vmem:[%s2502_s3 + $0x58] sm:$0xff] }
  0x12   :  { %274 = vmatpush.msrb.mxu2 %v188_v11 }
  0x13   :  { %v88_v13 = vadd.f32 %v1589_v9, %v87_v12  ;;  %v185_v12 = vld [vmem:[%s2502_s3 + $0x40] sm:$0xff] }
  0x14   :  { %275 = vmatpush.msrb.mxu2 %v185_v12 }
  0x15   :  { %v1808_v14 = vsel %vm89_vm1, %v1589_v9, %v88_v13 }
  0x7a   :  { %v83_v15 = vpop.xlane.xlu1 %82  ;;  %v80_v16 = vpop.xlane.xlu0 %79 }
  0x7b   :  { %v94_v17 = vmul.f32 %v1808_v14, %v83_v15  ;;  %v93_v18 = vmul.f32 %v1808_v14, %v80_v16 }
  0x7d   :  { %v1812_v19 = vsub.f32 %v47_v0, %v94_v17  ;;  %v1814_v20 = vsub.f32 %v46_v1, %v93_v18  ;;  %v1862_v0 = vld [vmem:[#allocation2] sm:$0xff] }
  0x7e   :  { %v167_v8 = vperm.slane %v1862_v0, 4  ;;  %v172_v16 = vperm.slane %v1862_v0, 5 }
  0x7f   :  { %v101_v21 = vmul.f32 %v1814_v20, %v1814_v20  ;;  %v102_v22 = vmul.f32 %v1812_v19, %v1812_v19 }
  0x81   :  { %v109_v23 = vsel %vm71_vm0, %v101_v21, 0.0  ;;  %v112_v24 = vsel %vm71_vm0, %v102_v22, 0.0  ;;  %v182_v22 = vld [vmem:[%s2502_s3 + $0x28] sm:$0xff] }
  0x82   :  { %110 = vadd.xlane.f32.xlu2 %v109_v23  ;;  %v77_v25 = vpop.xlane.xlu1 %76  ;;  %113 = vadd.xlane.f32.xlu0 %v112_v24  ;;  %v74_v26 = vpop.xlane.xlu0 %73 }
  0x83   :  { %v92_v27 = vmul.f32 %v1808_v14, %v77_v25  ;;  %v91_v28 = vmul.f32 %v1808_v14, %v74_v26  ;;  %276 = vmatpush.msrb.mxu2 %v182_v22 }
  0x85   :  { %v1824_v29 = vsub.f32 %v45_v4, %v92_v27  ;;  %v1826_v30 = vsub.f32 %v44_v5, %v91_v28  ;;  %v179_v27 = vld [vmem:[%s2502_s3 + $0x10] sm:$0xff]  ;;  %s1737_s3 = smov 96  }
  0x86   :  { %277 = vmatpush.msrb.mxu2 %v179_v27 }
  0x87   :  { %v100_v31 = vmul.f32 %v1824_v29, %v1824_v29  ;;  %v99_v32 = vmul.f32 %v1826_v30, %v1826_v30 }
  0x89   :  { %v106_v33 = vsel %vm71_vm0, %v100_v31, 0.0  ;;  %v103_v34 = vsel %vm71_vm0, %v99_v32, 0.0 }
  0x8a   :  { %107 = vadd.xlane.f32.xlu1 %v106_v33  ;;  %104 = vadd.xlane.f32.xlu2 %v103_v34 }
  0xf5   :  { %v111_v43 = vpop.xlane.xlu2 %110  ;;  %v114_v44 = vpop.xlane.xlu0 %113 }
  0xf6   :  { %v117_v45 = vmul.f32 %v111_v43, %v1808_v14  ;;  %v118_v46 = vmul.f32 %v114_v44, %v1808_v14 }
  0xf8   :  { %v121_v47 = vadd.f32 1e-05, %v117_v45  ;;  %v122_v48 = vadd.f32 1e-05, %v118_v46  ;;  %v189_v46 = vperm.slane %v1862_v0, 0 }
  0xfa   :  { %1590 = vrsqrt.f32 %v121_v47  ;;  %vm159_vm3 = vweird.f32 %v122_v48  ;;  %vm149_vm5 = vweird.f32 %v121_v47 }
  0xfb   :  { %1592 = vrsqrt.f32 %v122_v48 }
  0xfd   :  { %v108_v49 = vpop.xlane.xlu1 %107  ;;  %v105_v50 = vpop.xlane.xlu2 %104 }
  0xfe   :  { %v116_v51 = vmul.f32 %v108_v49, %v1808_v14  ;;  %v115_v52 = vmul.f32 %v105_v50, %v1808_v14 }
 0x100   :  { %v1591_v53 = vpop.eup %1590  ;;  %v120_v54 = vadd.f32 1e-05, %v116_v51  ;;  %v119_v55 = vadd.f32 1e-05, %v115_v52 }
 0x101   :  { %v1593_v56 = vpop.eup %1592  ;;  %v144_v57 = vmul.f32 %v1591_v53, %v121_v47  ;;  %vm150_vm2 = vweird.f32 %v1591_v53 }
 0x102   :  { %v154_v58 = vmul.f32 %v1593_v56, %v122_v48  ;;  %1594 = vrsqrt.f32 %v120_v54  ;;  %vm160_vm4 = vweird.f32 %v1593_v56  ;;  %vm151_vm6 = vmor %vm149_vm5, %vm150_vm2  ;;  %vm139_vm9 = vweird.f32 %v120_v54 }
 0x103   :  { %v145_v59 = vmul.f32 %v1591_v53, %v144_v57  ;;  %1596 = vrsqrt.f32 %v119_v55  ;;  %vm161_vm7 = vmor %vm159_vm3, %vm160_vm4  ;;  %vm129_vm11 = vweird.f32 %v119_v55  ;;  %vm1007_vm3 = vcmask 523264  }
 0x104   :  { %v155_v60 = vmul.f32 %v1593_v56, %v154_v58  ;;  %vm1012_vm4 = vcmask 785408  }
 0x105   :  { %v146_v61 = vmul.f32 0.5, %v145_v59  ;;  %v54_v59 = vld [vmem:[#allocation2 + $0x10] sm:$0xff] }
 0x106   :  { %v156_v62 = vmul.f32 0.5, %v155_v60  ;;  %v191_v60 = vperm.slane %v54_v59, 0 }
 0x107   :  { %v147_v63 = vsub.f32 1.5, %v146_v61 }
 0x108   :  { %v1595_v1 = vpop.eup %1594  ;;  %v157_v2 = vsub.f32 1.5, %v156_v62 }
 0x109   :  { %v1597_v3 = vpop.eup %1596  ;;  %v148_v4 = vmul.f32 %v1591_v53, %v147_v63  ;;  %v134_v5 = vmul.f32 %v1595_v1, %v120_v54  ;;  %vm140_vm10 = vweird.f32 %v1595_v1 }
 0x10a   :  { %v158_v6 = vmul.f32 %v1593_v56, %v157_v2  ;;  %v124_v7 = vmul.f32 %v1597_v3, %v119_v55  ;;  %vm130_vm8 = vweird.f32 %v1597_v3  ;;  %vm141_vm13 = vmor %vm139_vm9, %vm140_vm10 }
 0x10b   :  { %v152_v9 = vsel %vm151_vm6, %v1591_v53, %v148_v4  ;;  %v135_v10 = vmul.f32 %v1595_v1, %v134_v5  ;;  %vm131_vm12 = vmor %vm129_vm11, %vm130_vm8 }
 0x10c   :  { %v162_v13 = vsel %vm161_vm7, %v1593_v56, %v158_v6  ;;  %v125_v15 = vmul.f32 %v1597_v3, %v124_v7  ;;  %v165_v17 = vmul.f32 %v152_v9, %v1814_v20 }
 0x10d   :  { %v136_v18 = vmul.f32 0.5, %v135_v10  ;;  %v166_v21 = vmul.f32 %v162_v13, %v1812_v19 }
 0x10e   :  { %v126_v23 = vmul.f32 0.5, %v125_v15  ;;  %v170_v24 = vmul.f32 %v167_v8, %v165_v17 }
 0x10f   :  { %v137_v25 = vsub.f32 1.5, %v136_v18  ;;  %v171_v26 = vmul.f32 %v167_v8, %v166_v21  ;;  %v1945_v21 = vld [vmem:[%s2501_s2] sm:$0xff] }
 0x110   :  { %v127_v28 = vsub.f32 1.5, %v126_v23  ;;  %v175_v20 = vadd.f32 %v172_v16, %v170_v24  ;;  %vm55_vm14 = vcmp.gt.f32.partialorder %v1945_v21, 0.0  ;;  %v1740_v24 = vmov -1000000.0  }
 0x111   :  { %v176_v31 = vadd.f32 %v172_v16, %v171_v26  ;;  %v138_v19 = vmul.f32 %v1595_v1, %v137_v25  ;;  %v59_v25 = vsel %vm55_vm14, 1.0, %v1740_v24  ;;  %v63_v26 = vld [vmem:[%s2500_s1] sm:$0xff] }
 0x112   :  { %v128_v32 = vmul.f32 %v1597_v3, %v127_v28  ;;  %1470 = vmatmul.msk.f32.vlgmr.msra.gmra.mxu1 %vm71_vm0, %v175_v20  ;;  %v1957_v28 = vld [vmem:[%s2501_s2 + $0x8] sm:$0xff] }
 0x113   :  { %1467 = vmatmul.msk.f32.vlgmr.msra.gmra.mxu3 %vm71_vm0, %v176_v31  ;;  %v142_v35 = vsel %vm141_vm13, %v1595_v1, %v138_v19  ;;  %vm56_vm15 = vcmp.gt.f32.partialorder %v1957_v28, 0.0 }
 0x114   :  { %v132_v33 = vsel %vm131_vm12, %v1597_v3, %v128_v32  ;;  %v164_v38 = vmul.f32 %v142_v35, %v1824_v29  ;;  %v53_v29 = vld [vmem:[#allocation2 + $0x8] sm:$0xff]  ;;  %v60_v35 = vsel %vm56_vm15, 1.0, %v1740_v24 }
 0x115   :  { %v163_v34 = vmul.f32 %v132_v33, %v1826_v30  ;;  %v190_v30 = vperm.slane %v53_v29, 0 }
 0x116   :  { %v169_v39 = vmul.f32 %v167_v8, %v164_v38 }
 0x117   :  { %v168_v36 = vmul.f32 %v167_v8, %v163_v34 }
 0x118   :  { %v174_v40 = vadd.f32 %v172_v16, %v169_v39  ;;  %v1978_v39 = vld [vmem:[%s2501_s2 + $0x10] sm:$0xff] }
 0x119   :  { %v173_v37 = vadd.f32 %v172_v16, %v168_v36  ;;  %v64_v36 = vld [vmem:[%s2500_s1 + $0x8] sm:$0xff]  ;;  %vm57_vm1 = vcmp.gt.f32.partialorder %v1978_v39, 0.0 }
 0x11a   :  { %1471 = vmatmul.msk.f32.gmra.mxu1 %vm71_vm0, %v176_v31  ;;  %v1980_v29 = vmul.f32 %v64_v36, %v60_v35 }
 0x11b   :  { %1464 = vmatmul.msk.f32.vlgmr.msra.gmra.mxu2 %vm71_vm0, %v173_v37  ;;  %1468 = vmatmul.msk.f32.vlgmr.msra.gmra.mxu0 %vm71_vm0, %v173_v37 }
 0x123   :  { %1465 = vmatmul.msk.f32.gmra.mxu2 %vm71_vm0, %v174_v40  ;;  %1469 = vmatmul.msk.f32.gmra.mxu0 %vm71_vm0, %v174_v40 }
 0x12b   :  { %1466 = vmatmul.msk.f32.gmra.mxu2 %vm71_vm0, %v175_v20 }
 0x133   :  { %1472 = vmatmul.msk.f32.vlgmr.msrb.gmra.mxu2 %vm71_vm0, %v173_v37 }
 0x13b   :  { %1473 = vmatmul.msk.f32.gmra.mxu2 %vm71_vm0, %v174_v40 }
 0x143   :  { %1474 = vmatmul.msk.f32.gmra.mxu2 %vm71_vm0, %v175_v20 }
 0x14b   :  { %1475 = vmatmul.msk.f32.gmra.mxu2 %vm71_vm0, %v176_v31  ;;  %v1960_v31 = vmul.f32 %v63_v26, %v59_v25 }
 0x18f   :  { %v256_v41 = vpop.f32.mrf.mxu1 }
 0x190   :  { %v257_v42 = vadd.f32 %v256_v41, %v190_v30 }
 0x192   :  { %453 = vrot.lane.b32.xlu0 %v257_v42, %s1737_s3 }
 0x196   :  { %v230_v56 = vpop.f32.mrf.mxu3 }
 0x197   :  { %v259_v43 = vpop.f32.mrf.mxu1  ;;  %v231_v58 = vadd.f32 %v230_v56, %v189_v46 }
 0x198   :  { %v250_v44 = vpop.f32.mrf.mxu0  ;;  %v260_v45 = vadd.f32 %v259_v43, %v190_v30 }
 0x199   :  { %v251_v49 = vadd.f32 %v250_v44, %v190_v30  ;;  %v61_v44 = vsel %vm57_vm1, 1.0, %v1740_v24 }
 0x19a   :  { %455 = vrot.lane.b32.xlu2 %v260_v45, %s1737_s3  ;;  %1476 = vmatpush.xpose.msk.msrb.mxu3 %vm71_vm0, %v260_v45 }
 0x19e   :  { %v221_v47 = vpop.f32.mrf.mxu2  ;;  %1477 = vmatpush.xpose.msk.msrb.mxu3 %vm71_vm0, %v257_v42 }
 0x19f   :  { %v222_v48 = vadd.f32 %v221_v47, %v189_v46 }
 0x1a0   :  { %v253_v50 = vpop.f32.mrf.mxu0 }
 0x1a1   :  { %v254_v51 = vadd.f32 %v253_v50, %v190_v30  ;;  %441 = vrot.lane.b32.xlu0 %v222_v48, %s1737_s3 }
 0x1a2   :  { %449 = vrot.lane.b32.xlu2 %v251_v49, %s1737_s3 }
 0x1a3   :  { %451 = vrot.lane.b32.xlu1 %v254_v51, %s1737_s3  ;;  %1478 = vmatpush.xpose.msk.msrb.mxu3 %vm71_vm0, %v254_v51 }
 0x1a6   :  { %v224_v52 = vpop.f32.mrf.mxu2 }
 0x1a7   :  { %1479 = vmatpush.xpose.msk.msrb.mxu3 %vm71_vm0, %v251_v49  ;;  %v225_v54 = vadd.f32 %v224_v52, %v189_v46 }
 0x1a9   :  { %797 = vrot.lane.b32.xlu0 %v257_v42, %s1738_s18 }
 0x1aa   :  { %1480 = vmatmul.msk.f32.vlgmr.msrb.gmra.mxu3 %vm71_vm0, %v222_v48  ;;  %799 = vrot.lane.b32.xlu2 %v260_v45, %s1738_s18 }
 0x1ab   :  { %627 = vrot.lane.b32.xlu1 %v257_v42, %s1739_s19 }
 0x1ae   :  { %v227_v53 = vpop.f32.mrf.mxu2 }
 0x1af   :  { %v228_v55 = vadd.f32 %v227_v53, %v189_v46 }
 0x1b1   :  { %629 = vrot.lane.b32.xlu0 %v260_v45, %s1739_s19  ;;  %v65_v45 = vld [vmem:[%s2500_s1 + $0x10] sm:$0xff] }
 0x1b2   :  { %1481 = vmatmul.msk.f32.gmra.mxu3 %vm71_vm0, %v225_v54  ;;  %443 = vrot.lane.b32.xlu2 %v225_v54, %s1737_s3  ;;  %v2000_v50 = vmul.f32 %v65_v45, %v61_v44 }
 0x1b3   :  { %445 = vrot.lane.b32.xlu1 %v228_v55, %s1737_s3 }
 0x1b6   :  { %v279_v57 = vpop.f32.mrf.mxu2 }
 0x1b7   :  { %v280_v62 = vadd.f32 %v279_v57, %v191_v60 }
 0x1b9   :  { %795 = vrot.lane.b32.xlu0 %v254_v51, %s1738_s18 }
 0x1ba   :  { %1482 = vmatmul.msk.f32.gmra.mxu3 %vm71_vm0, %v228_v55  ;;  %447 = vrot.lane.b32.xlu2 %v231_v58, %s1737_s3 }
 0x1bb   :  { %625 = vrot.lane.b32.xlu1 %v254_v51, %s1739_s19 }
 0x1be   :  { %v282_v61 = vpop.f32.mrf.mxu2 }
 0x1bf   :  { %v283_v63 = vadd.f32 %v282_v61, %v191_v60 }
 0x1c1   :  { %615 = vrot.lane.b32.xlu0 %v222_v48, %s1739_s19  ;;  %v1917_v0 = vpack.i.bf16 %v280_v62, %v283_v63 }
 0x1c2   :  { %1483 = vmatmul.msk.f32.gmra.mxu3 %vm71_vm0, %v231_v58  ;;  %623 = vrot.lane.b32.xlu2 %v251_v49, %s1739_s19 }
 0x1c3   :  { %793 = vrot.lane.b32.xlu1 %v251_v49, %s1738_s18 }
 0x1c6   :  { %v285_v1 = vpop.f32.mrf.mxu2 }
 0x1c7   :  { %v286_v3 = vadd.f32 %v285_v1, %v191_v60 }
 0x1c9   :  { %787 = vrot.lane.b32.xlu0 %v225_v54, %s1738_s18 }
 0x1ca   :  { %785 = vrot.lane.b32.xlu2 %v222_v48, %s1738_s18  ;;  %v1998_v48 = vld [vmem:[%s2501_s2 + $0x18] sm:$0xff] }
 0x1cb   :  { %617 = vrot.lane.b32.xlu1 %v225_v54, %s1739_s19  ;;  %vm58_vm2 = vcmp.gt.f32.partialorder %v1998_v48, 0.0 }
 0x1cc   :  { %v62_v57 = vsel %vm58_vm2, 1.0, %v1740_v24 }
 0x1ce   :  { %v288_v2 = vpop.f32.mrf.mxu2 }
 0x1cf   :  { %v289_v4 = vadd.f32 %v288_v2, %v191_v60 }
 0x1d1   :  { %424 = vmatpush.msrb.mxu0 %v289_v4  ;;  %621 = vrot.lane.b32.xlu0 %v231_v58, %s1739_s19  ;;  %v1926_v5 = vpack.i.bf16 %v286_v3, %v289_v4 }
 0x1d2   :  { %619 = vrot.lane.b32.xlu2 %v228_v55, %s1739_s19 }
 0x1d3   :  { %789 = vrot.lane.b32.xlu1 %v228_v55, %s1738_s18  ;;  %425 = vmatpush.msrb.mxu0 %v286_v3 }
 0x1d5   :  { %426 = vmatpush.msrb.mxu0 %v283_v63 }
 0x1d7   :  { %427 = vmatpush.msrb.mxu0 %v280_v62 }
 0x1d9   :  { %1554 = vrot.lane.b32.xlu0 %v1917_v0, %s1737_s3 }
 0x1da   :  { %791 = vrot.lane.b32.xlu2 %v231_v58, %s1738_s18  ;;  %v66_v58 = vld [vmem:[%s2500_s1 + $0x18] sm:$0xff] }
 0x1db   :  { %v2011_v61 = vmul.f32 %v66_v58, %v62_v57 }
 0x1e2   :  { %1559 = vrot.lane.b32.xlu2 %v1926_v5, %s1737_s3 }
 0x1f4   :  { %v456_v6 = vpop.permute.xlu2 %455 }
 0x1f5   :  { %1488 = vmatpush.xpose.msk.msrb.mxu1 %vm71_vm0, %v456_v6 }
 0x1fc   :  { %v450_v7 = vpop.permute.xlu2 %449 }
 0x204   :  { %v800_v8 = vpop.permute.xlu2 %799  ;;  %v454_v9 = vpop.permute.xlu0 %453 }
 0x205   :  { %1489 = vmatpush.xpose.msk.msrb.mxu1 %vm71_vm0, %v454_v9 }
 0x20c   :  { %v444_v10 = vpop.permute.xlu2 %443 }
 0x213   :  { %v442_v11 = vpop.permute.xlu0 %441 }
 0x214   :  { %v448_v12 = vpop.permute.xlu2 %447 }
 0x215   :  { %v452_v13 = vpop.permute.xlu1 %451 }
 0x216   :  { %1490 = vmatpush.xpose.msk.msrb.mxu1 %vm71_vm0, %v452_v13 }
 0x21a   :  { %1491 = vmatpush.xpose.msk.msrb.mxu1 %vm71_vm0, %v450_v7 }
 0x21b   :  { %v798_v15 = vpop.permute.xlu0 %797 }
 0x21c   :  { %v624_v16 = vpop.permute.xlu2 %623 }
 0x21d   :  { %v628_v17 = vpop.permute.xlu1 %627  ;;  %1492 = vmatmul.msk.f32.vlgmr.msrb.gmra.mxu1 %vm71_vm0, %v442_v11 }
 0x21e   :  { %1512 = vmatpush.xpose.msk.msra.mxu1 %vm71_vm0, %v800_v8 }
 0x222   :  { %1513 = vmatpush.xpose.msk.msra.mxu1 %vm71_vm0, %v798_v15 }
 0x223   :  { %v630_v18 = vpop.permute.xlu0 %629 }
 0x224   :  { %1500 = vmatpush.xpose.msk.msra.mxu3 %vm71_vm0, %v630_v18  ;;  %v786_v22 = vpop.permute.xlu2 %785 }
 0x225   :  { %v446_v23 = vpop.permute.xlu1 %445  ;;  %1493 = vmatmul.msk.f32.gmra.mxu1 %vm71_vm0, %v444_v10 }
 0x228   :  { %1501 = vmatpush.xpose.msk.msra.mxu3 %vm71_vm0, %v628_v17 }
 0x22b   :  { %v796_v27 = vpop.permute.xlu0 %795 }
 0x22c   :  { %1514 = vmatpush.xpose.msk.msra.mxu1 %vm71_vm0, %v796_v27  ;;  %v620_v20 = vpop.permute.xlu2 %619 }
 0x22d   :  { %v626_v19 = vpop.permute.xlu1 %625  ;;  %v332_v32 = vpop.f32.mrf.mxu3  ;;  %1494 = vmatmul.msk.f32.gmra.mxu1 %vm71_vm0, %v446_v23 }
 0x22e   :  { %v344_v33 = vmul.f32 %v332_v32, %v1945_v21  ;;  %1502 = vmatpush.xpose.msk.msra.mxu3 %vm71_vm0, %v626_v19 }
 0x230   :  { %v1967_v34 = vadd.f32 %v344_v33, %v1960_v31 }
 0x232   :  { %1503 = vmatpush.xpose.msk.msra.mxu3 %vm71_vm0, %v624_v16  ;;  %v352_v37 = vsel %vm71_vm0, %v1967_v34, -inf }
 0x233   :  { %353 = vmax.xlane.f32.xlu0 %v352_v37  ;;  %v616_v38 = vpop.permute.xlu0 %615 }
 0x234   :  { %v792_v40 = vpop.permute.xlu2 %791 }
 0x235   :  { %v794_v30 = vpop.permute.xlu1 %793  ;;  %v335_v41 = vpop.f32.mrf.mxu3  ;;  %1495 = vmatmul.msk.f32.gmra.mxu1 %vm71_vm0, %v448_v12  ;;  %1504 = vmatmul.msk.f32.vlgmr.msra.gmra.mxu3 %vm71_vm0, %v616_v38 }
 0x236   :  { %v345_v42 = vmul.f32 %v335_v41, %v1957_v28  ;;  %1515 = vmatpush.xpose.msk.msra.mxu1 %vm71_vm0, %v794_v30 }
 0x238   :  { %v1988_v43 = vadd.f32 %v345_v42, %v1980_v29 }
 0x23a   :  { %v355_v46 = vsel %vm71_vm0, %v1988_v43, -inf }
 0x23b   :  { %356 = vmax.xlane.f32.xlu1 %v355_v46  ;;  %v788_v47 = vpop.permute.xlu0 %787 }
 0x23c   :  { %v1560_v49 = vpop.permute.xlu2 %1559 }
 0x23d   :  { %v618_v51 = vpop.permute.xlu1 %617  ;;  %v338_v52 = vpop.f32.mrf.mxu3  ;;  %v1561_v53 = vunpack.i.l.bf16 %v1560_v49  ;;  %1516 = vmatmul.msk.f32.vlgmr.msra.gmra.mxu1 %vm71_vm0, %v786_v22  ;;  %v1562_v55 = vunpack.i.h.bf16 %v1560_v49 }
 0x23e   :  { %v346_v54 = vmul.f32 %v338_v52, %v1978_v39  ;;  %1505 = vmatmul.msk.f32.gmra.mxu3 %vm71_vm0, %v618_v51 }
 0x23f   :  { %598 = vmatpush.msra.mxu2 %v1561_v53 }
 0x240   :  { %v350_v56 = vadd.f32 %v346_v54, %v2000_v50 }
 0x241   :  { %599 = vmatpush.msra.mxu2 %v1562_v55 }
 0x242   :  { %v358_v59 = vsel %vm71_vm0, %v350_v56, -inf }
 0x243   :  { %359 = vmax.xlane.f32.xlu2 %v358_v59  ;;  %v622_v60 = vpop.permute.xlu0 %621 }
 0x245   :  { %v341_v62 = vpop.f32.mrf.mxu3  ;;  %1517 = vmatmul.msk.f32.gmra.mxu1 %vm71_vm0, %v788_v47  ;;  %v790_v4 = vpop.permute.xlu1 %789 }
 0x246   :  { %v347_v63 = vmul.f32 %v341_v62, %v1998_v48  ;;  %1506 = vmatmul.msk.f32.gmra.mxu3 %vm71_vm0, %v620_v20 }
 0x248   :  { %v2017_v1 = vadd.f32 %v347_v63, %v2011_v61 }
 0x24a   :  { %v361_v2 = vsel %vm71_vm0, %v2017_v1, -inf }
 0x24b   :  { %362 = vmax.xlane.f32.xlu0 %v361_v2  ;;  %v1555_v3 = vpop.permute.xlu0 %1554 }
 0x24c   :  { %v1556_v6 = vunpack.i.l.bf16 %v1555_v3  ;;  %v1557_v7 = vunpack.i.h.bf16 %v1555_v3 }
 0x24d   :  { %1518 = vmatmul.msk.f32.gmra.mxu1 %vm71_vm0, %v790_v4 }
 0x24e   :  { %600 = vmatpush.msra.mxu2 %v1556_v6  ;;  %1507 = vmatmul.msk.f32.gmra.mxu3 %vm71_vm0, %v622_v60 }
 0x250   :  { %601 = vmatpush.msra.mxu2 %v1557_v7 }
 0x255   :  { %1519 = vmatmul.msk.f32.gmra.mxu1 %vm71_vm0, %v792_v40 }
 0x29a   :  { %v490_v8 = vpop.f32.mrf.mxu1 }
 0x29b   :  { %v502_v9 = vmul.f32 %v490_v8, %v1945_v21 }
 0x29d   :  { %v2026_v10 = vadd.f32 %v502_v9, %v1960_v31 }
 0x29f   :  { %v510_v11 = vsel %vm71_vm0, %v2026_v10, -inf }
 0x2a0   :  { %511 = vmax.xlane.f32.xlu1 %v510_v11 }
 0x2a2   :  { %v493_v12 = vpop.f32.mrf.mxu1 }
 0x2a3   :  { %v503_v13 = vmul.f32 %v493_v12, %v1957_v28 }
 0x2a5   :  { %v2032_v15 = vadd.f32 %v503_v13, %v1980_v29 }
 0x2a6   :  { %v354_v16 = vpop.xlane.xlu0 %353 }
 0x2a7   :  { %v364_v17 = vsub.f32 %v1967_v34, %v354_v16  ;;  %v513_v18 = vsel %vm71_vm0, %v2032_v15, -inf }
 0x2a8   :  { %514 = vmax.xlane.f32.xlu2 %v513_v18 }
 0x2a9   :  { %v368_v22 = vmul.f32 1.442695, %v364_v17 }
 0x2aa   :  { %v496_v23 = vpop.f32.mrf.mxu1 }
 0x2ab   :  { %v504_v24 = vmul.f32 %v496_v23, %v1978_v39  ;;  %1598 = vpow2.f32 %v368_v22 }
 0x2ad   :  { %v2039_v25 = vadd.f32 %v504_v24, %v2000_v50 }
 0x2ae   :  { %v357_v35 = vpop.xlane.xlu1 %356 }
 0x2af   :  { %v516_v26 = vsel %vm71_vm0, %v2039_v25, -inf  ;;  %v365_v30 = vsub.f32 %v1988_v43, %v357_v35 }
 0x2b0   :  { %517 = vmax.xlane.f32.xlu0 %v516_v26 }
 0x2b1   :  { %v2043_v20 = vpop.eup %1598  ;;  %v370_v44 = vmul.f32 1.442695, %v365_v30 }
 0x2b2   :  { %v499_v27 = vpop.f32.mrf.mxu1  ;;  %v376_v33 = vsel %vm71_vm0, %v2043_v20, 0.0 }
 0x2b3   :  { %v505_v41 = vmul.f32 %v499_v27, %v1998_v48 }
 0x2b5   :  { %v2058_v47 = vadd.f32 %v505_v41, %v2011_v61 }
 0x2b6   :  { %v360_v19 = vpop.xlane.xlu2 %359 }
 0x2b7   :  { %v366_v32 = vsub.f32 %v350_v56, %v360_v19  ;;  %v519_v54 = vsel %vm71_vm0, %v2058_v47, -inf }
 0x2b8   :  { %v664_v34 = vpop.f32.mrf.mxu3  ;;  %377 = vadd.xlane.f32.xlu0 %v376_v33 }
 0x2b9   :  { %v372_v36 = vmul.f32 1.442695, %v366_v32  ;;  %v676_v37 = vmul.f32 %v664_v34, %v1945_v21 }
 0x2ba   :  { %v834_v38 = vpop.f32.mrf.mxu1 }
 0x2bb   :  { %1600 = vpow2.f32 %v372_v36  ;;  %v2049_v40 = vadd.f32 %v676_v37, %v1960_v31  ;;  %v846_v3 = vmul.f32 %v834_v38, %v1945_v21 }
 0x2bc   :  { %1602 = vpow2.f32 %v370_v44 }
 0x2bd   :  { %v684_v42 = vsel %vm71_vm0, %v2049_v40, -inf  ;;  %v2090_v9 = vadd.f32 %v846_v3, %v1960_v31 }
 0x2be   :  { %685 = vmax.xlane.f32.xlu1 %v684_v42  ;;  %v363_v59 = vpop.xlane.xlu0 %362 }
 0x2bf   :  { %v367_v2 = vsub.f32 %v2017_v1, %v363_v59  ;;  %v854_v1 = vsel %vm71_vm0, %v2090_v9, -inf }
 0x2c1   :  { %v2055_v45 = vpop.eup %1600  ;;  %v667_v46 = vpop.f32.mrf.mxu3  ;;  %v374_v6 = vmul.f32 1.442695, %v367_v2 }
 0x2c2   :  { %v677_v49 = vmul.f32 %v667_v46, %v1957_v28  ;;  %v837_v51 = vpop.f32.mrf.mxu1  ;;  %v382_v52 = vsel %vm71_vm0, %v2055_v45, 0.0  ;;  %v2074_v58 = vpop.eup %1602 }
 0x2c3   :  { %v847_v43 = vmul.f32 %v837_v51, %v1957_v28  ;;  %383 = vadd.xlane.f32.xlu0 %v382_v52  ;;  %1604 = vpow2.f32 %v374_v6 }
 0x2c4   :  { %v2065_v53 = vadd.f32 %v677_v49, %v1980_v29 }
 0x2c5   :  { %v2072_v56 = vadd.f32 %v847_v43, %v1980_v29  ;;  %v379_v29 = vsel %vm71_vm0, %v2074_v58, 0.0 }
 0x2c6   :  { %520 = vmax.xlane.f32.xlu1 %v519_v54  ;;  %v687_v55 = vsel %vm71_vm0, %v2065_v53, -inf }
 0x2c7   :  { %688 = vmax.xlane.f32.xlu2 %v687_v55  ;;  %v857_v62 = vsel %vm71_vm0, %v2072_v56, -inf }
 0x2c9   :  { %v670_v57 = vpop.f32.mrf.mxu3  ;;  %v2099_v16 = vpop.eup %1604 }
 0x2ca   :  { %v678_v60 = vmul.f32 %v670_v57, %v1978_v39  ;;  %v840_v13 = vpop.f32.mrf.mxu1  ;;  %v385_v31 = vsel %vm71_vm0, %v2099_v16, 0.0 }
 0x2cb   :  { %858 = vmax.xlane.f32.xlu0 %v857_v62  ;;  %v848_v17 = vmul.f32 %v840_v13, %v1978_v39 }
 0x2cc   :  { %v2080_v63 = vadd.f32 %v678_v60, %v2000_v50 }
 0x2cd   :  { %v2105_v18 = vadd.f32 %v848_v17, %v2000_v50 }
 0x2ce   :  { %380 = vadd.xlane.f32.xlu1 %v379_v29  ;;  %v690_v4 = vsel %vm71_vm0, %v2080_v63, -inf }
 0x2cf   :  { %691 = vmax.xlane.f32.xlu2 %v690_v4  ;;  %v860_v24 = vsel %vm71_vm0, %v2105_v18, -inf }
 0x2d1   :  { %v673_v7 = vpop.f32.mrf.mxu3 }
 0x2d2   :  { %v679_v8 = vmul.f32 %v673_v7, %v1998_v48  ;;  %v843_v22 = vpop.f32.mrf.mxu1 }
 0x2d3   :  { %v849_v23 = vmul.f32 %v843_v22, %v1998_v48 }
 0x2d4   :  { %v2093_v11 = vadd.f32 %v679_v8, %v2011_v61 }
 0x2d5   :  { %v2111_v26 = vadd.f32 %v849_v23, %v2011_v61 }
 0x2d6   :  { %v693_v12 = vsel %vm71_vm0, %v2093_v11, -inf }
 0x2d7   :  { %855 = vmax.xlane.f32.xlu2 %v854_v1  ;;  %694 = vmax.xlane.f32.xlu1 %v693_v12  ;;  %v863_v27 = vsel %vm71_vm0, %v2111_v26, -inf }
 0x2df   :  { %386 = vadd.xlane.f32.xlu1 %v385_v31 }
 0x2e7   :  { %861 = vmax.xlane.f32.xlu1 %v860_v24 }
 0x2ef   :  { %864 = vmax.xlane.f32.xlu1 %v863_v27 }
 0x313   :  { %v512_v19 = vpop.xlane.xlu1 %511 }
 0x314   :  { %v522_v32 = vsub.f32 %v2026_v10, %v512_v19 }
 0x316   :  { %v526_v33 = vmul.f32 1.442695, %v522_v32 }
 0x318   :  { %1606 = vpow2.f32 %v526_v33 }
 0x31b   :  { %v515_v30 = vpop.xlane.xlu2 %514 }
 0x31c   :  { %v523_v49 = vsub.f32 %v2032_v15, %v515_v30 }
 0x31e   :  { %v2116_v50 = vpop.eup %1606  ;;  %v528_v43 = vmul.f32 1.442695, %v523_v49 }
 0x31f   :  { %v534_v34 = vsel %vm71_vm0, %v2116_v50, 0.0 }
 0x320   :  { %535 = vadd.xlane.f32.xlu0 %v534_v34 }
 0x323   :  { %v518_v35 = vpop.xlane.xlu0 %517 }
 0x324   :  { %v524_v36 = vsub.f32 %v2039_v25, %v518_v35 }
 0x326   :  { %v530_v61 = vmul.f32 1.442695, %v524_v36 }
 0x328   :  { %1608 = vpow2.f32 %v530_v61 }
 0x32b   :  { %v378_v37 = vpop.xlane.xlu0 %377 }
 0x32c   :  { %1610 = vrcp.f32 %v378_v37 }
 0x32e   :  { %v2121_v38 = vpop.eup %1608 }
 0x32f   :  { %v540_v10 = vsel %vm71_vm0, %v2121_v38, 0.0 }
 0x330   :  { %541 = vadd.xlane.f32.xlu2 %v540_v10 }
 0x331   :  { %v686_v41 = vpop.xlane.xlu1 %685 }
 0x332   :  { %v1611_v42 = vpop.eup %1610  ;;  %v696_v44 = vsub.f32 %v2049_v40, %v686_v41 }
 0x333   :  { %v392_v46 = vmul.f32 %v1611_v42, %v2043_v20 }
 0x334   :  { %v700_v25 = vmul.f32 1.442695, %v696_v44  ;;  %1569 = vrot.lane.b32.xlu0 %v1917_v0, %s1738_s18 }
 0x335   :  { %v396_v51 = vmul.f32 %v392_v46, %v1945_v21 }
 0x336   :  { %1612 = vpow2.f32 %v700_v25  ;;  %v384_v52 = vpop.xlane.xlu0 %383 }
 0x337   :  { %1484 = vmatmul.msk.f32.vlgmr.msrb.gmra.mxu0 %vm71_vm0, %v396_v51  ;;  %1614 = vpow2.f32 %v528_v43 }
 0x339   :  { %v521_v54 = vpop.xlane.xlu1 %520 }
 0x33a   :  { %v2132_v55 = vpop.xlane.xlu2 %688  ;;  %v525_v20 = vsub.f32 %v2058_v47, %v521_v54 }
 0x33b   :  { %v697_v10 = vsub.f32 %v2065_v53, %v2132_v55 }
 0x33c   :  { %v2134_v57 = vpop.eup %1612  ;;  %1579 = vrot.lane.b32.xlu0 %v1917_v0, %s1739_s19  ;;  %v532_v60 = vmul.f32 1.442695, %v525_v20 }
 0x33d   :  { %v708_v15 = vsel %vm71_vm0, %v2134_v57, 0.0  ;;  %v2142_v29 = vpop.eup %1614  ;;  %v702_v41 = vmul.f32 1.442695, %v697_v10 }
 0x33e   :  { %709 = vadd.xlane.f32.xlu1 %v708_v15  ;;  %v859_v40 = vpop.xlane.xlu0 %858  ;;  %v537_v47 = vsel %vm71_vm0, %v2142_v29, 0.0 }
 0x33f   :  { %v867_v59 = vsub.f32 %v2072_v56, %v859_v40 }
 0x341   :  { %v872_v62 = vmul.f32 1.442695, %v867_v59  ;;  %v381_v2 = vpop.xlane.xlu1 %380 }
 0x342   :  { %1616 = vrcp.f32 %v381_v2  ;;  %v692_v3 = vpop.xlane.xlu2 %691 }
 0x343   :  { %1618 = vpow2.f32 %v872_v62 }
 0x344   :  { %1620 = vpow2.f32 %v532_v60 }
 0x345   :  { %1622 = vrcp.f32 %v384_v52 }
 0x346   :  { %538 = vadd.xlane.f32.xlu1 %v537_v47 }
 0x348   :  { %v1617_v0 = vpop.eup %1616 }
 0x349   :  { %v2146_v4 = vpop.eup %1618  ;;  %v393_v6 = vmul.f32 %v1617_v0, %v2074_v58 }
 0x34a   :  { %v2149_v56 = vpop.eup %1620  ;;  %v856_v7 = vpop.xlane.xlu2 %855  ;;  %v881_v1 = vsel %vm71_vm0, %v2146_v4, 0.0 }
 0x34b   :  { %v695_v8 = vpop.xlane.xlu1 %694  ;;  %v866_v12 = vsub.f32 %v2090_v9, %v856_v7  ;;  %882 = vadd.xlane.f32.xlu2 %v881_v1  ;;  %v397_v13 = vmul.f32 %v393_v6, %v1957_v28  ;;  %v1623_v17 = vpop.eup %1622  ;;  %v543_v22 = vsel %vm71_vm0, %v2149_v56, 0.0 }
 0x34c   :  { %v394_v58 = vmul.f32 %v1623_v17, %v2055_v45  ;;  %v699_v49 = vsub.f32 %v2093_v11, %v695_v8 }
 0x34d   :  { %v870_v31 = vmul.f32 1.442695, %v866_v12  ;;  %1485 = vmatmul.msk.f32.gmra.mxu0 %vm71_vm0, %v397_v13 }
 0x34e   :  { %544 = vadd.xlane.f32.xlu1 %v543_v22  ;;  %v398_v24 = vmul.f32 %v394_v58, %v1978_v39  ;;  %v706_v52 = vmul.f32 1.442695, %v699_v49 }
 0x34f   :  { %1624 = vpow2.f32 %v870_v31 }
 0x353   :  { %v387_v23 = vpop.xlane.xlu1 %386 }
 0x354   :  { %1626 = vrcp.f32 %v387_v23 }
 0x355   :  { %v2160_v27 = vpop.eup %1624  ;;  %1486 = vmatmul.msk.f32.gmra.mxu0 %vm71_vm0, %v398_v24 }
 0x356   :  { %v878_v9 = vsel %vm71_vm0, %v2160_v27, 0.0 }
 0x357   :  { %879 = vadd.xlane.f32.xlu1 %v878_v9 }
 0x35a   :  { %v1627_v19 = vpop.eup %1626 }
 0x35b   :  { %v862_v32 = vpop.xlane.xlu1 %861  ;;  %v395_v33 = vmul.f32 %v1627_v19, %v2099_v16  ;;  %v698_v16 = vsub.f32 %v2080_v63, %v692_v3 }
 0x35c   :  { %v868_v34 = vsub.f32 %v2105_v18, %v862_v32 }
 0x35d   :  { %v399_v45 = vmul.f32 %v395_v33, %v1998_v48  ;;  %v704_v18 = vmul.f32 1.442695, %v698_v16 }
 0x35e   :  { %v874_v35 = vmul.f32 1.442695, %v868_v34 }
 0x35f   :  { %1487 = vmatmul.msk.f32.gmra.mxu0 %vm71_vm0, %v399_v45 }
 0x360   :  { %1628 = vpow2.f32 %v874_v35 }
 0x361   :  { %1630 = vpow2.f32 %v704_v18 }
 0x362   :  { %1632 = vpow2.f32 %v702_v41 }
 0x363   :  { %1574 = vrot.lane.b32.xlu2 %v1926_v5, %s1739_s19  ;;  %v865_v42 = vpop.xlane.xlu1 %864 }
 0x364   :  { %v869_v44 = vsub.f32 %v2111_v26, %v865_v42 }
 0x366   :  { %v2171_v36 = vpop.eup %1628 }
 0x367   :  { %v884_v61 = vsel %vm71_vm0, %v2171_v36, 0.0  ;;  %v2178_v37 = vpop.eup %1630 }
 0x368   :  { %885 = vadd.xlane.f32.xlu0 %v884_v61  ;;  %v714_v30 = vsel %vm71_vm0, %v2178_v37, 0.0  ;;  %v2185_v63 = vpop.eup %1632 }
 0x369   :  { %v711_v53 = vsel %vm71_vm0, %v2185_v63, 0.0 }
 0x370   :  { %1564 = vrot.lane.b32.xlu1 %v1926_v5, %s1738_s18  ;;  %v876_v5 = vmul.f32 1.442695, %v869_v44 }
 0x38c   :  { %715 = vadd.xlane.f32.xlu2 %v714_v30 }
 0x393   :  { %v536_v46 = vpop.xlane.xlu0 %535 }
 0x394   :  { %1634 = vrcp.f32 %v536_v46 }
 0x395   :  { %1636 = vpow2.f32 %v876_v5 }
 0x396   :  { %1638 = vpow2.f32 %v706_v52 }
 0x39a   :  { %v1635_v25 = vpop.eup %1634  ;;  %712 = vadd.xlane.f32.xlu1 %v711_v53 }
 0x39b   :  { %v550_v51 = vmul.f32 %v1635_v25, %v2116_v50  ;;  %v2192_v54 = vpop.eup %1636 }
 0x39c   :  { %v887_v26 = vsel %vm71_vm0, %v2192_v54, 0.0  ;;  %v2197_v11 = vpop.eup %1638 }
 0x39d   :  { %v554_v43 = vmul.f32 %v550_v51, %v1945_v21  ;;  %v717_v55 = vsel %vm71_vm0, %v2197_v11, 0.0 }
 0x39f   :  { %1496 = vmatmul.msk.f32.vlgmr.msra.gmra.mxu2 %vm71_vm0, %v554_v43 }
 0x3a2   :  { %888 = vadd.xlane.f32.xlu1 %v887_v26 }
 0x3a3   :  { %v542_v50 = vpop.xlane.xlu2 %541 }
 0x3a6   :  { %v1570_v40 = vpop.permute.xlu0 %1569 }
 0x3a7   :  { %v1571_v34 = vunpack.i.l.bf16 %v1570_v40  ;;  %v1572_v45 = vunpack.i.h.bf16 %v1570_v40 }
 0x3aa   :  { %718 = vadd.xlane.f32.xlu1 %v717_v55 }
 0x3ae   :  { %v1580_v1 = vpop.permute.xlu0 %1579 }
 0x3af   :  { %v1581_v17 = vunpack.i.l.bf16 %v1580_v1  ;;  %v1582_v22 = vunpack.i.h.bf16 %v1580_v1 }
 0x3b1   :  { %v710_v20 = vpop.xlane.xlu1 %709 }
 0x3b4   :  { %v2233_v26 = vpop.f32.mrf.mxu0 }
 0x3b9   :  { %v539_v15 = vpop.xlane.xlu1 %538 }
 0x3ba   :  { %1640 = vrcp.f32 %v539_v15 }
 0x3bb   :  { %1642 = vrcp.f32 %v542_v50 }
 0x3bc   :  { %1644 = vrcp.f32 %v710_v20 }
 0x3be   :  { %v883_v59 = vpop.xlane.xlu2 %882 }
 0x3c0   :  { %v1641_v60 = vpop.eup %1640 }
 0x3c1   :  { %v551_v62 = vmul.f32 %v1641_v60, %v2142_v29  ;;  %v545_v2 = vpop.xlane.xlu1 %544  ;;  %v1643_v47 = vpop.eup %1642 }
 0x3c2   :  { %1646 = vrcp.f32 %v545_v2  ;;  %v1645_v6 = vpop.eup %1644  ;;  %v552_v8 = vmul.f32 %v1643_v47, %v2121_v38  ;;  %v1031_v47 = vld [vmem:[%s2503_s4 + $0x70] sm:$0xff] }
 0x3c3   :  { %v555_v3 = vmul.f32 %v551_v62, %v1957_v28  ;;  %v724_v13 = vmul.f32 %v1645_v6, %v2134_v57  ;;  %v1029_v6 = vld [vmem:[%s2503_s4 + $0x60] sm:$0xff] }
 0x3c4   :  { %v556_v29 = vmul.f32 %v552_v8, %v1978_v39  ;;  %v1028_v8 = vld [vmem:[%s2503_s4 + $0x58] sm:$0xff] }
 0x3c5   :  { %1497 = vmatmul.msk.f32.gmra.mxu2 %vm71_vm0, %v555_v3  ;;  %v728_v58 = vmul.f32 %v724_v13, %v1945_v21  ;;  %v1032_v3 = vld [vmem:[%s2503_s4 + $0x78] sm:$0xff]  ;;  %v1026_v13 = vld [vmem:[%s2503_s4 + $0x48] sm:$0xff] }
 0x3c6   :  { %v1575_v0 = vpop.permute.xlu2 %1574  ;;  %1034 = vmatpush.msrb.mxu3 %v1032_v3 }
 0x3c7   :  { %v1576_v7 = vunpack.i.l.bf16 %v1575_v0  ;;  %v1577_v12 = vunpack.i.h.bf16 %v1575_v0  ;;  %v1030_v0 = vld [vmem:[%s2503_s4 + $0x68] sm:$0xff] }
 0x3c8   :  { %v1647_v31 = vpop.eup %1646  ;;  %1035 = vmatpush.msrb.mxu3 %v1031_v47 }
 0x3c9   :  { %768 = vmatpush.msra.mxu0 %v1576_v7  ;;  %v553_v23 = vmul.f32 %v1647_v31, %v2149_v56  ;;  %v1023_v31 = vld [vmem:[%s2503_s4 + $0x30] sm:$0xff] }
 0x3ca   :  { %v880_v57 = vpop.xlane.xlu1 %879  ;;  %1036 = vmatpush.msrb.mxu3 %v1030_v0 }
 0x3cb   :  { %769 = vmatpush.msra.mxu0 %v1577_v12  ;;  %v557_v38 = vmul.f32 %v553_v23, %v1998_v48  ;;  %1648 = vrcp.f32 %v880_v57  ;;  %v1027_v12 = vld [vmem:[%s2503_s4 + $0x50] sm:$0xff]  ;;  %v1020_v23 = vld [vmem:[%s2503_s4 + $0x18] sm:$0xff]  ;;  %v1018_v57 = vld [vmem:[%s2503_s4 + $0x8] sm:$0xff] }
 0x3cc   :  { %1650 = vrcp.f32 %v883_v59  ;;  %1037 = vmatpush.msrb.mxu3 %v1029_v6 }
 0x3cd   :  { %1498 = vmatmul.msk.f32.gmra.mxu2 %vm71_vm0, %v556_v29  ;;  %770 = vmatpush.msra.mxu0 %v1581_v17  ;;  %v1025_v17 = vld [vmem:[%s2503_s4 + $0x40] sm:$0xff]  ;;  %v1024_v29 = vld [vmem:[%s2503_s4 + $0x38] sm:$0xff] }
 0x3ce   :  { %1038 = vmatpush.msrb.mxu3 %v1028_v8 }
 0x3cf   :  { %771 = vmatpush.msra.mxu0 %v1582_v22  ;;  %v1022_v22 = vld [vmem:[%s2503_s4 + $0x28] sm:$0xff] }
 0x3d0   :  { %1508 = vmatmul.msk.f32.vlgmr.msra.gmra.mxu0 %vm71_vm0, %v728_v58  ;;  %1039 = vmatpush.msrb.mxu3 %v1027_v12  ;;  %v1021_v58 = vld [vmem:[%s2503_s4 + $0x20] sm:$0xff] }
 0x3d1   :  { %v1649_v9 = vpop.eup %1648 }
 0x3d2   :  { %v894_v33 = vmul.f32 %v1649_v9, %v2160_v27  ;;  %v1651_v61 = vpop.eup %1650  ;;  %1040 = vmatpush.msrb.mxu3 %v1026_v13 }
 0x3d3   :  { %v895_v16 = vmul.f32 %v1651_v61, %v2146_v4 }
 0x3d4   :  { %v898_v56 = vmul.f32 %v894_v33, %v1945_v21  ;;  %1041 = vmatpush.msrb.mxu3 %v1025_v17 }
 0x3d5   :  { %1499 = vmatmul.msk.f32.gmra.mxu2 %vm71_vm0, %v557_v38  ;;  %v899_v18 = vmul.f32 %v895_v16, %v1957_v28  ;;  %v1019_v38 = vld [vmem:[%s2503_s4 + $0x10] sm:$0xff] }
 0x3d6   :  { %1042 = vmatpush.msrb.mxu3 %v1024_v29 }
 0x3d8   :  { %1043 = vmatpush.msrb.mxu3 %v1023_v31 }
 0x3da   :  { %1044 = vmatpush.msrb.mxu3 %v1022_v22 }
 0x3db   :  { %v886_v35 = vpop.xlane.xlu0 %885 }
 0x3dc   :  { %1652 = vrcp.f32 %v886_v35  ;;  %1045 = vmatpush.msrb.mxu3 %v1021_v58 }
 0x3de   :  { %1046 = vmatpush.msrb.mxu3 %v1020_v23 }
 0x3e0   :  { %1047 = vmatpush.msrb.mxu3 %v1019_v38 }
 0x3e2   :  { %v1565_v24 = vpop.permute.xlu1 %1564  ;;  %v1653_v10 = vpop.eup %1652  ;;  %1048 = vmatpush.msrb.mxu3 %v1018_v57 }
 0x3e3   :  { %v1566_v19 = vunpack.i.l.bf16 %v1565_v24  ;;  %v1567_v32 = vunpack.i.h.bf16 %v1565_v24  ;;  %v896_v27 = vmul.f32 %v1653_v10, %v2171_v36  ;;  %v1017_v24 = vld [vmem:[%s2503_s4] sm:$0xff] }
 0x3e4   :  { %1049 = vmatpush.msrb.mxu3 %v1017_v24 }
 0x3e5   :  { %938 = vmatpush.msrb.mxu2 %v1566_v19  ;;  %v900_v30 = vmul.f32 %v896_v27, %v1978_v39 }
 0x3e7   :  { %939 = vmatpush.msrb.mxu2 %v1567_v32 }
 0x3e9   :  { %940 = vmatpush.msrb.mxu2 %v1571_v34 }
 0x3eb   :  { %941 = vmatpush.msrb.mxu2 %v1572_v45 }
 0x3ec   :  { %1520 = vmatmul.msk.f32.vlgmr.msrb.gmra.mxu2 %vm71_vm0, %v898_v56 }
 0x3f4   :  { %1521 = vmatmul.msk.f32.gmra.mxu2 %vm71_vm0, %v899_v18 }
 0x3fc   :  { %1522 = vmatmul.msk.f32.gmra.mxu2 %vm71_vm0, %v900_v30 }
 0x3ff   :  { %v716_v41 = vpop.xlane.xlu2 %715 }
 0x40d   :  { %v713_v21 = vpop.xlane.xlu1 %712 }
 0x40e   :  { %1654 = vrcp.f32 %v713_v21 }
 0x40f   :  { %1656 = vrcp.f32 %v716_v41 }
 0x414   :  { %v1655_v42 = vpop.eup %1654 }
 0x415   :  { %v889_v44 = vpop.xlane.xlu1 %888  ;;  %v725_v46 = vmul.f32 %v1655_v42, %v2185_v63  ;;  %v1657_v5 = vpop.eup %1656 }
 0x416   :  { %1658 = vrcp.f32 %v889_v44  ;;  %v726_v36 = vmul.f32 %v1657_v5, %v2178_v37  ;;  %v2236_v37 = vpop.f32.mrf.mxu0 }
 0x417   :  { %v729_v4 = vmul.f32 %v725_v46, %v1957_v28 }
 0x418   :  { %v730_v51 = vmul.f32 %v726_v36, %v1978_v39 }
 0x419   :  { %1509 = vmatmul.msk.f32.gmra.mxu0 %vm71_vm0, %v729_v4 }
 0x41c   :  { %v1659_v49 = vpop.eup %1658 }
 0x41d   :  { %v719_v53 = vpop.xlane.xlu1 %718  ;;  %v897_v25 = vmul.f32 %v1659_v49, %v2192_v54 }
 0x41e   :  { %1660 = vrcp.f32 %v719_v53  ;;  %v2238_v54 = vpop.f32.mrf.mxu0 }
 0x41f   :  { %v901_v52 = vmul.f32 %v897_v25, %v1998_v48 }
 0x421   :  { %1510 = vmatmul.msk.f32.gmra.mxu0 %vm71_vm0, %v730_v51  ;;  %1523 = vmatmul.msk.f32.gmra.mxu2 %vm71_vm0, %v901_v52  ;;  %v2317_v51 = vld [vmem:[#allocation2] sm:$0xff] }
 0x422   :  { %v603_v39 = vpop.f32.mrf.mxu2  ;;  %v1033_v52 = vperm.slane %v2317_v51, 1 }
 0x424   :  { %v1661_v63 = vpop.eup %1660 }
 0x425   :  { %v727_v28 = vmul.f32 %v1661_v63, %v2197_v11 }
 0x426   :  { %v2240_v55 = vpop.f32.mrf.mxu0 }
 0x427   :  { %v731_v43 = vmul.f32 %v727_v28, %v1998_v48 }
 0x429   :  { %1511 = vmatmul.msk.f32.gmra.mxu0 %vm71_vm0, %v731_v43  ;;  %v1679_v43 = vld [vmem:[%s2499_s0] sm:$0xff] }
 0x448   :  { %v606_v20 = vpop.f32.mrf.mxu2 }
 0x449   :  { %v1583_v50 = vpack.i.bf16 %v606_v20, %v603_v39 }
 0x44b   :  { %1584 = vrot.lane.b32.xlu0 %v1583_v50, %s1738_s18 }
 0x44d   :  { %v773_v15 = vpop.f32.mrf.mxu0 }
 0x44e   :  { %975 = vrot.lane.b32.xlu2 %v773_v15, %s1739_s19 }
 0x450   :  { %v609_v11 = vpop.f32.mrf.mxu2 }
 0x458   :  { %v612_v48 = vpop.f32.mrf.mxu2 }
 0x46f   :  { %v943_v40 = vpop.f32.mrf.mxu2 }
 0x470   :  { %991 = vrot.lane.b32.xlu1 %v943_v40, %s1737_s3 }
 0x477   :  { %v946_v59 = vpop.f32.mrf.mxu2 }
 0x478   :  { %993 = vrot.lane.b32.xlu2 %v946_v59, %s1737_s3 }
 0x47f   :  { %v949_v60 = vpop.f32.mrf.mxu2 }
 0x480   :  { %995 = vrot.lane.b32.xlu2 %v949_v60, %s1737_s3 }
 0x496   :  { %v776_v62 = vpop.f32.mrf.mxu0 }
 0x497   :  { %977 = vrot.lane.b32.xlu0 %v776_v62, %s1739_s19 }
 0x49e   :  { %v779_v2 = vpop.f32.mrf.mxu0 }
 0x49f   :  { %963 = vrot.lane.b32.xlu0 %v609_v11, %s1738_s18  ;;  %979 = vrot.lane.b32.xlu1 %v779_v2, %s1739_s19  ;;  %v1682_v2 = vld [vmem:[%s2499_s0 + $0x18] sm:$0xff] }
 0x4a4   :  { %v952_v7 = vpop.f32.mrf.mxu2 }
 0x4a5   :  { %997 = vrot.lane.b32.xlu2 %v952_v7, %s1737_s3 }
 0x4a6   :  { %v782_v1 = vpop.f32.mrf.mxu0 }
 0x4a7   :  { %965 = vrot.lane.b32.xlu0 %v612_v48, %s1738_s18  ;;  %981 = vrot.lane.b32.xlu1 %v782_v1, %s1739_s19  ;;  %v1681_v48 = vld [vmem:[%s2499_s0 + $0x10] sm:$0xff] }
 0x4a8   :  { %v976_v33 = vpop.permute.xlu2 %975 }
 0x4bd   :  { %v1585_v9 = vpop.permute.xlu0 %1584 }
 0x4be   :  { %v1586_v19 = vunpack.i.l.bf16 %v1585_v9  ;;  %v1587_v35 = vunpack.i.h.bf16 %v1585_v9 }
 0x4c0   :  { %v1003_v32 = vsel %vm71_vm0, %v2233_v26, %v1586_v19  ;;  %v1004_v18 = vsel %vm71_vm0, %v2236_v37, %v1587_v35  ;;  %v1165_v35 = vld [vmem:[%s2504_s5] sm:$0xff] }
 0x4c1   :  { %v1008_v34 = vsel %vm1007_vm3, %v1003_v32, %v976_v33 }
 0x4d2   :  { %v994_v61 = vpop.permute.xlu2 %993 }
 0x4da   :  { %v996_v42 = vpop.permute.xlu2 %995 }
 0x4e2   :  { %v992_v45 = vpop.permute.xlu1 %991 }
 0x4e3   :  { %v1013_v56 = vsel %vm1012_vm4, %v1008_v34, %v992_v45  ;;  %v1168_v34 = vld [vmem:[%s2504_s5 + $0x18] sm:$0xff]  ;;  %v1167_v45 = vld [vmem:[%s2504_s5 + $0x10] sm:$0xff] }
 0x4e4   :  { %1050 = vmatmul.f32.vlgmr.msrb.gmra.mxu3 %v1013_v56  ;;  %1194 = vmatpush.msrb.mxu0 %v1168_v34  ;;  %v1166_v56 = vld [vmem:[%s2504_s5 + $0x8] sm:$0xff] }
 0x4e6   :  { %1195 = vmatpush.msrb.mxu0 %v1167_v45  ;;  %v2398_v45 = vperm.slane %v2317_v51, 2 }
 0x4e8   :  { %1196 = vmatpush.msrb.mxu0 %v1166_v56 }
 0x4ea   :  { %1197 = vmatpush.msrb.mxu0 %v1165_v35 }
 0x4ff   :  { %v998_v49 = vpop.permute.xlu2 %997 }
 0x509   :  { %v978_v16 = vpop.permute.xlu0 %977 }
 0x50a   :  { %v1009_v10 = vsel %vm1007_vm3, %v1004_v18, %v978_v16 }
 0x50b   :  { %v1014_v27 = vsel %vm1012_vm4, %v1009_v10, %v994_v61 }
 0x50c   :  { %1053 = vmatmul.f32.gmra.mxu3 %v1014_v27 }
 0x511   :  { %v964_v30 = vpop.permute.xlu0 %963  ;;  %v980_v21 = vpop.permute.xlu1 %979 }
 0x512   :  { %v1005_v41 = vsel %vm71_vm0, %v2238_v54, %v964_v30 }
 0x513   :  { %v1010_v44 = vsel %vm1007_vm3, %v1005_v41, %v980_v21 }
 0x514   :  { %v1015_v46 = vsel %vm1012_vm4, %v1010_v44, %v996_v42  ;;  %v1155_v44 = vperm.slane %v2317_v51, 6 }
 0x515   :  { %1056 = vmatmul.f32.gmra.mxu3 %v1015_v46 }
 0x519   :  { %v966_v4 = vpop.permute.xlu0 %965  ;;  %v982_v5 = vpop.permute.xlu1 %981 }
 0x51a   :  { %v1006_v36 = vsel %vm71_vm0, %v2240_v55, %v966_v4  ;;  %v1680_v55 = vld [vmem:[%s2499_s0 + $0x8] sm:$0xff]  ;;  %s1743_s0 = smov 8  }
 0x51b   :  { %v1011_v53 = vsel %vm1007_vm3, %v1006_v36, %v982_v5  ;;  %v1160_v5 = vperm.slane %v2317_v51, 7 }
 0x51c   :  { %v1016_v25 = vsel %vm1012_vm4, %v1011_v53, %v998_v49 }
 0x51d   :  { %1059 = vmatmul.f32.gmra.mxu3 %v1016_v25 }
 0x567   :  { %v1051_v63 = vpop.f32.mrf.mxu3 }
 0x568   :  { %v1052_v28 = vadd.f32 %v1051_v63, %v1033_v52 }
 0x56a   :  { %v2323_v26 = vadd.f32 %v1679_v43, %v1052_v28 }
 0x56c   :  { %v1067_v37 = vsel %vm71_vm0, %v2323_v26, 0.0 }
 0x56d   :  { %1068 = vadd.xlane.f32.xlu0 %v1067_v37 }
 0x58f   :  { %v1054_v54 = vpop.f32.mrf.mxu3 }
 0x590   :  { %v1055_v39 = vadd.f32 %v1054_v54, %v1033_v52 }
 0x592   :  { %v2330_v20 = vadd.f32 %v1680_v55, %v1055_v39 }
 0x594   :  { %v1070_v50 = vsel %vm71_vm0, %v2330_v20, 0.0 }
 0x595   :  { %1071 = vadd.xlane.f32.xlu1 %v1070_v50 }
 0x598   :  { %v1057_v15 = vpop.f32.mrf.mxu3 }
 0x599   :  { %v1058_v11 = vadd.f32 %v1057_v15, %v1033_v52 }
 0x59b   :  { %v2337_v40 = vadd.f32 %v1681_v48, %v1058_v11 }
 0x59d   :  { %v1073_v59 = vsel %vm71_vm0, %v2337_v40, 0.0 }
 0x59e   :  { %1074 = vadd.xlane.f32.xlu2 %v1073_v59 }
 0x5a0   :  { %v1060_v60 = vpop.f32.mrf.mxu3 }
 0x5a1   :  { %v1061_v62 = vadd.f32 %v1060_v60, %v1033_v52 }
 0x5a3   :  { %v2344_v3 = vadd.f32 %v1682_v2, %v1061_v62 }
 0x5a5   :  { %v1076_v47 = vsel %vm71_vm0, %v2344_v3, 0.0 }
 0x5a6   :  { %1077 = vadd.xlane.f32.xlu0 %v1076_v47 }
 0x5e0   :  { %v1069_v0 = vpop.xlane.xlu0 %1068 }
 0x5e1   :  { %v1079_v6 = vmul.f32 %v1069_v0, %v1808_v14 }
 0x5e3   :  { %v1083_v7 = vsub.f32 %v2323_v26, %v1079_v6 }
 0x5e5   :  { %v1087_v8 = vmul.f32 %v1083_v7, %v1083_v7 }
 0x5e7   :  { %v1091_v1 = vsel %vm71_vm0, %v1087_v8, 0.0 }
 0x5e8   :  { %1092 = vadd.xlane.f32.xlu1 %v1091_v1 }
 0x608   :  { %v1072_v12 = vpop.xlane.xlu1 %1071 }
 0x609   :  { %v1080_v13 = vmul.f32 %v1072_v12, %v1808_v14 }
 0x60b   :  { %v2353_v17 = vsub.f32 %v2330_v20, %v1080_v13 }
 0x60d   :  { %v1088_v29 = vmul.f32 %v2353_v17, %v2353_v17 }
 0x60f   :  { %v1094_v31 = vsel %vm71_vm0, %v1088_v29, 0.0 }
 0x610   :  { %1095 = vadd.xlane.f32.xlu2 %v1094_v31 }
 0x611   :  { %v1075_v22 = vpop.xlane.xlu2 %1074 }
 0x612   :  { %v1081_v58 = vmul.f32 %v1075_v22, %v1808_v14 }
 0x614   :  { %v2360_v23 = vsub.f32 %v2337_v40, %v1081_v58 }
 0x616   :  { %v1089_v38 = vmul.f32 %v2360_v23, %v2360_v23 }
 0x618   :  { %v1097_v57 = vsel %vm71_vm0, %v1089_v38, 0.0 }
 0x619   :  { %v1078_v24 = vpop.xlane.xlu0 %1077  ;;  %1098 = vadd.xlane.f32.xlu0 %v1097_v57 }
 0x61a   :  { %v1082_v9 = vmul.f32 %v1078_v24, %v1808_v14 }
 0x61c   :  { %v2367_v19 = vsub.f32 %v2344_v3, %v1082_v9 }
 0x61e   :  { %v1090_v32 = vmul.f32 %v2367_v19, %v2367_v19 }
 0x620   :  { %v1100_v33 = vsel %vm71_vm0, %v1090_v32, 0.0 }
 0x621   :  { %1101 = vadd.xlane.f32.xlu1 %v1100_v33 }
 0x65b   :  { %v1093_v61 = vpop.xlane.xlu1 %1092 }
 0x65c   :  { %v1103_v16 = vmul.f32 %v1093_v61, %v1808_v14 }
 0x65e   :  { %v1107_v18 = vadd.f32 1e-05, %v1103_v16 }
 0x660   :  { %1662 = vrsqrt.f32 %v1107_v18  ;;  %vm1117_vm6 = vweird.f32 %v1107_v18 }
 0x666   :  { %v1663_v10 = vpop.eup %1662 }
 0x667   :  { %v1112_v27 = vmul.f32 %v1663_v10, %v1107_v18  ;;  %vm1118_vm5 = vweird.f32 %v1663_v10  ;;  %v1394_v18 = vld [vmem:[%s2505_s6 + $0x38] sm:$0xff] }
 0x668   :  { %vm1119_vm7 = vmor %vm1117_vm6, %vm1118_vm5  ;;  %1416 = vmatpush.msrb.mxu1 %v1394_v18 }
 0x669   :  { %v1113_v30 = vmul.f32 %v1663_v10, %v1112_v27  ;;  %v1393_v27 = vld [vmem:[%s2505_s6 + $0x30] sm:$0xff] }
 0x66a   :  { %1417 = vmatpush.msrb.mxu1 %v1393_v27 }
 0x66b   :  { %v1114_v21 = vmul.f32 0.5, %v1113_v30 }
 0x66d   :  { %v1115_v41 = vsub.f32 1.5, %v1114_v21 }
 0x66f   :  { %v1116_v42 = vmul.f32 %v1663_v10, %v1115_v41  ;;  %v1392_v41 = vld [vmem:[%s2505_s6 + $0x28] sm:$0xff] }
 0x670   :  { %1418 = vmatpush.msrb.mxu1 %v1392_v41 }
 0x671   :  { %v1120_v46 = vsel %vm1119_vm7, %v1663_v10, %v1116_v42 }
 0x672   :  { %v1151_v4 = vmul.f32 %v1120_v46, %v1083_v7  ;;  %v1391_v46 = vld [vmem:[%s2505_s6 + $0x20] sm:$0xff] }
 0x673   :  { %1419 = vmatpush.msrb.mxu1 %v1391_v46 }
 0x674   :  { %v1156_v36 = vmul.f32 %v1155_v44, %v1151_v4 }
 0x676   :  { %v1161_v49 = vadd.f32 %v1160_v5, %v1156_v36 }
 0x678   :  { %1524 = vmatmul.msk.f32.vlgmr.msrb.gmra.mxu0 %vm71_vm0, %v1161_v49 }
 0x683   :  { %v1096_v53 = vpop.xlane.xlu2 %1095 }
 0x684   :  { %v1104_v25 = vmul.f32 %v1096_v53, %v1808_v14  ;;  %v1389_v53 = vld [vmem:[%s2505_s6 + $0x10] sm:$0xff] }
 0x686   :  { %v1108_v52 = vadd.f32 1e-05, %v1104_v25 }
 0x688   :  { %1664 = vrsqrt.f32 %v1108_v52  ;;  %vm1127_vm9 = vweird.f32 %v1108_v52 }
 0x68c   :  { %v1099_v63 = vpop.xlane.xlu0 %1098 }
 0x68d   :  { %v1105_v28 = vmul.f32 %v1099_v63, %v1808_v14 }
 0x68e   :  { %v1665_v43 = vpop.eup %1664 }
 0x68f   :  { %v1122_v37 = vmul.f32 %v1665_v43, %v1108_v52  ;;  %v1109_v54 = vadd.f32 1e-05, %v1105_v28  ;;  %vm1128_vm8 = vweird.f32 %v1665_v43  ;;  %v1388_v52 = vld [vmem:[%s2505_s6 + $0x8] sm:$0xff] }
 0x690   :  { %vm1129_vm10 = vmor %vm1127_vm9, %vm1128_vm8 }
 0x691   :  { %v1123_v39 = vmul.f32 %v1665_v43, %v1122_v37  ;;  %1666 = vrsqrt.f32 %v1109_v54  ;;  %vm1137_vm12 = vweird.f32 %v1109_v54 }
 0x693   :  { %v1124_v55 = vmul.f32 0.5, %v1123_v39 }
 0x694   :  { %v1102_v50 = vpop.xlane.xlu1 %1101 }
 0x695   :  { %v1125_v15 = vsub.f32 1.5, %v1124_v55  ;;  %v1106_v11 = vmul.f32 %v1102_v50, %v1808_v14 }
 0x697   :  { %v1667_v48 = vpop.eup %1666  ;;  %v1126_v59 = vmul.f32 %v1665_v43, %v1125_v15  ;;  %v1110_v60 = vadd.f32 1e-05, %v1106_v11 }
 0x698   :  { %v1132_v62 = vmul.f32 %v1667_v48, %v1109_v54  ;;  %vm1138_vm11 = vweird.f32 %v1667_v48 }
 0x699   :  { %v1130_v2 = vsel %vm1129_vm10, %v1665_v43, %v1126_v59  ;;  %1668 = vrsqrt.f32 %v1110_v60  ;;  %vm1139_vm13 = vmor %vm1137_vm12, %vm1138_vm11  ;;  %vm1147_vm15 = vweird.f32 %v1110_v60  ;;  %v1387_v43 = vld [vmem:[%s2505_s6] sm:$0xff] }
 0x69a   :  { %v1133_v47 = vmul.f32 %v1667_v48, %v1132_v62  ;;  %v1152_v0 = vmul.f32 %v1130_v2, %v2353_v17 }
 0x69c   :  { %v1134_v6 = vmul.f32 0.5, %v1133_v47  ;;  %v1157_v7 = vmul.f32 %v1155_v44, %v1152_v0 }
 0x69e   :  { %v1135_v8 = vsub.f32 1.5, %v1134_v6  ;;  %v1162_v1 = vadd.f32 %v1160_v5, %v1157_v7 }
 0x69f   :  { %v1669_v12 = vpop.eup %1668 }
 0x6a0   :  { %v1136_v13 = vmul.f32 %v1667_v48, %v1135_v8  ;;  %v1142_v14 = vmul.f32 %v1669_v12, %v1110_v60  ;;  %1525 = vmatmul.msk.f32.gmra.mxu0 %vm71_vm0, %v1162_v1  ;;  %vm1148_vm14 = vweird.f32 %v1669_v12 }
 0x6a1   :  { %vm1149_vm1 = vmor %vm1147_vm15, %vm1148_vm14 }
 0x6a2   :  { %v1140_v29 = vsel %vm1139_vm13, %v1667_v48, %v1136_v13  ;;  %v1143_v31 = vmul.f32 %v1669_v12, %v1142_v14 }
 0x6a3   :  { %v1153_v22 = vmul.f32 %v1140_v29, %v2360_v23 }
 0x6a4   :  { %v1144_v58 = vmul.f32 0.5, %v1143_v31 }
 0x6a5   :  { %v1158_v38 = vmul.f32 %v1155_v44, %v1153_v22 }
 0x6a6   :  { %v1145_v57 = vsub.f32 1.5, %v1144_v58 }
 0x6a7   :  { %v1163_v17 = vadd.f32 %v1160_v5, %v1158_v38 }
 0x6a8   :  { %v1146_v24 = vmul.f32 %v1669_v12, %v1145_v57 }
 0x6a9   :  { %1526 = vmatmul.msk.f32.gmra.mxu0 %vm71_vm0, %v1163_v17 }
 0x6aa   :  { %v1150_v9 = vsel %vm1149_vm1, %v1669_v12, %v1146_v24 }
 0x6ab   :  { %v1154_v32 = vmul.f32 %v1150_v9, %v2367_v19 }
 0x6ad   :  { %v1159_v33 = vmul.f32 %v1155_v44, %v1154_v32 }
 0x6af   :  { %v1164_v34 = vadd.f32 %v1160_v5, %v1159_v33  ;;  %v1390_v5 = vld [vmem:[%s2505_s6 + $0x18] sm:$0xff]  ;;  %s1741_s6 = smov [#allocation5]  }
 0x6b0   :  { %1420 = vmatpush.msrb.mxu1 %v1390_v5  ;;  %s1449_s21 = sshll.u32 %s1741_s6, 4  ;;  %s1450_s21 = int_to_ptr.vmem [resolvable:$true] %s1449_s21 }
 0x6b1   :  { %1527 = vmatmul.msk.f32.gmra.mxu0 %vm71_vm0, %v1164_v34 }
 0x6b2   :  { %1421 = vmatpush.msrb.mxu1 %v1389_v53 }
 0x6b4   :  { %1422 = vmatpush.msrb.mxu1 %v1388_v52 }
 0x6b6   :  { %1423 = vmatpush.msrb.mxu1 %v1387_v43 }
 0x6f5   :  { %v1199_v23 = vpop.f32.mrf.mxu0 }
 0x6f6   :  { %v2401_v56 = vadd.f32 %v1199_v23, %v2398_v45 }
 0x6f8   :  { %v1215_v35 = vmul.f32 0.70710677, %v2401_v56  ;;  %v1211_v9 = vmul.f32 0.5, %v2401_v56 }
 0x6fa   :  { %v1219_v61 = vmul.f32 %v1215_v35, %v1215_v35 }
 0x6fc   :  { %v1220_v16 = vmin.f32 %v1219_v61, 16.0 }
 0x6fe   :  { %v1221_v19 = vmul.f32 2.1237322e-06, %v1220_v16  ;;  %v1232_v10 = vmul.f32 3.8918573e-05, %v1220_v16 }
 0x700   :  { %v1222_v30 = vadd.f32 0.00028619796, %v1221_v19  ;;  %v1233_v21 = vadd.f32 0.001143296, %v1232_v10 }
 0x702   :  { %v1223_v42 = vmul.f32 %v1222_v30, %v1220_v16  ;;  %v1234_v44 = vmul.f32 %v1233_v21, %v1220_v16 }
 0x704   :  { %v1235_v4 = vadd.f32 0.014752088, %v1234_v44  ;;  %v1224_v36 = vadd.f32 0.0036580483, %v1223_v42 }
 0x706   :  { %v1236_v49 = vmul.f32 %v1235_v4, %v1220_v16  ;;  %v1225_v63 = vmul.f32 %v1224_v36, %v1220_v16 }
 0x708   :  { %v1237_v25 = vadd.f32 0.112945676, %v1236_v49  ;;  %v1226_v54 = vadd.f32 0.05243302, %v1225_v63 }
 0x70a   :  { %v1238_v28 = vmul.f32 %v1237_v25, %v1220_v16  ;;  %v1227_v50 = vmul.f32 %v1226_v54, %v1220_v16 }
 0x70c   :  { %v1239_v37 = vadd.f32 0.4994258, %v1238_v28  ;;  %v1228_v15 = vadd.f32 0.18741608, %v1227_v50 }
 0x70e   :  { %v1240_v39 = vmul.f32 %v1239_v37, %v1220_v16  ;;  %v1229_v48 = vmul.f32 %v1228_v15, %v1220_v16 }
 0x710   :  { %v1241_v55 = vadd.f32 1.0, %v1240_v39  ;;  %v1230_v2 = vadd.f32 1.1283791, %v1229_v48 }
 0x712   :  { %1670 = vrcp.f32 %v1241_v55  ;;  %v1253_v62 = vand.u32 2147483648, %v1241_v55  ;;  %v1251_v0 = vand.u32 2147483647, %v1241_v55  ;;  %vm1247_vm4 = vweird.f32 %v1241_v55 }
 0x713   :  { %v1231_v13 = vmul.f32 %v1230_v2, %v1215_v35 }
 0x714   :  { %v1254_v1 = vor.u32 1.1754944e-38, %v1253_v62  ;;  %vm1252_vm6 = vcmp.eq.f32.partialorder %v1251_v0, 8.507059e+37 }
 0x718   :  { %v1671_v11 = vpop.eup %1670 }
 0x719   :  { %v1243_v59 = vmul.f32 %v1671_v11, %v1241_v55  ;;  %vm1248_vm2 = vweird.f32 %v1671_v11 }
 0x71a   :  { %vm1249_vm5 = vmor %vm1247_vm4, %vm1248_vm2 }
 0x71b   :  { %v1244_v60 = vsub.f32 1.0, %v1243_v59 }
 0x71d   :  { %v1245_v47 = vmul.f32 %v1671_v11, %v1244_v60  ;;  %v1202_v6 = vpop.f32.mrf.mxu0 }
 0x71e   :  { %v2429_v7 = vadd.f32 %v1202_v6, %v2398_v45 }
 0x71f   :  { %v1246_v8 = vadd.f32 %v1671_v11, %v1245_v47 }
 0x720   :  { %v2432_v12 = vmul.f32 0.70710677, %v2429_v7 }
 0x721   :  { %v1250_v14 = vsel %vm1249_vm5, %v1671_v11, %v1246_v8 }
 0x722   :  { %v1255_v29 = vsel %vm1252_vm6, %v1254_v1, %v1250_v14  ;;  %v1259_v31 = vmul.f32 %v2432_v12, %v2432_v12 }
 0x723   :  { %v1256_v22 = vmul.f32 %v1255_v29, %v1231_v13 }
 0x724   :  { %v1260_v58 = vmin.f32 %v1259_v31, 16.0 }
 0x725   :  { %v1528_v38 = vclamps-f32 %v1256_v22, 1.0 }
 0x726   :  { %v1261_v57 = vmul.f32 2.1237322e-06, %v1260_v58  ;;  %v1272_v17 = vmul.f32 3.8918573e-05, %v1260_v58  ;;  %v1205_v24 = vpop.f32.mrf.mxu0 }
 0x727   :  { %v1379_v32 = vadd.f32 1.0, %v1528_v38  ;;  %v2438_v33 = vadd.f32 %v1205_v24, %v2398_v45 }
 0x728   :  { %v1262_v34 = vadd.f32 0.00028619796, %v1261_v57  ;;  %v1273_v23 = vadd.f32 0.001143296, %v1272_v17 }
 0x729   :  { %v1383_v35 = vmul.f32 %v1379_v32, %v1211_v9  ;;  %v2441_v61 = vmul.f32 0.70710677, %v2438_v33 }
 0x72a   :  { %v1263_v16 = vmul.f32 %v1262_v34, %v1260_v58  ;;  %v1274_v18 = vmul.f32 %v1273_v23, %v1260_v58 }
 0x72b   :  { %v1299_v19 = vmul.f32 %v2441_v61, %v2441_v61  ;;  %1532 = vmatmul.msk.f32.vlgmr.msrb.gmra.mxu1 %vm1007_vm3, %v1383_v35 }
 0x72c   :  { %v1264_v10 = vadd.f32 0.0036580483, %v1263_v16  ;;  %v1275_v27 = vadd.f32 0.014752088, %v1274_v18 }
 0x72d   :  { %v2446_v56 = vmin.f32 %v1299_v19, 16.0 }
 0x72e   :  { %v1276_v30 = vmul.f32 %v1275_v27, %v1260_v58  ;;  %v1208_v21 = vpop.f32.mrf.mxu0  ;;  %v1265_v46 = vmul.f32 %v1264_v10, %v1260_v58 }
 0x72f   :  { %v1301_v41 = vmul.f32 2.1237322e-06, %v2446_v56  ;;  %v1312_v42 = vmul.f32 3.8918573e-05, %v2446_v56  ;;  %v2451_v44 = vadd.f32 %v1208_v21, %v2398_v45 }
 0x730   :  { %v1277_v4 = vadd.f32 0.112945676, %v1276_v30  ;;  %v1266_v63 = vadd.f32 0.05243302, %v1265_v46 }
 0x731   :  { %v1302_v5 = vadd.f32 0.00028619796, %v1301_v41  ;;  %v1313_v36 = vadd.f32 0.001143296, %v1312_v42  ;;  %v2454_v53 = vmul.f32 0.70710677, %v2451_v44 }
 0x732   :  { %v1278_v49 = vmul.f32 %v1277_v4, %v1260_v58  ;;  %v1267_v50 = vmul.f32 %v1266_v63, %v1260_v58 }
 0x733   :  { %v1303_v25 = vmul.f32 %v1302_v5, %v2446_v56  ;;  %v1314_v52 = vmul.f32 %v1313_v36, %v2446_v56  ;;  %v1339_v43 = vmul.f32 %v2454_v53, %v2454_v53 }
 0x734   :  { %v1279_v28 = vadd.f32 0.4994258, %v1278_v49  ;;  %v1268_v47 = vadd.f32 0.18741608, %v1267_v50  ;;  %v1212_v50 = vmul.f32 0.5, %v2429_v7 }
 0x735   :  { %v1315_v37 = vadd.f32 0.014752088, %v1314_v52  ;;  %v1304_v54 = vadd.f32 0.0036580483, %v1303_v25  ;;  %v2460_v39 = vmin.f32 %v1339_v43, 16.0 }
 0x736   :  { %v1280_v45 = vmul.f32 %v1279_v28, %v1260_v58  ;;  %v1269_v31 = vmul.f32 %v1268_v47, %v1260_v58 }
 0x737   :  { %v1316_v55 = vmul.f32 %v1315_v37, %v2446_v56  ;;  %v1341_v11 = vmul.f32 2.1237322e-06, %v2460_v39  ;;  %v1352_v59 = vmul.f32 3.8918573e-05, %v2460_v39  ;;  %v1305_v60 = vmul.f32 %v1304_v54, %v2446_v56 }
 0x738   :  { %v1281_v15 = vadd.f32 1.0, %v1280_v45  ;;  %v1270_v34 = vadd.f32 1.1283791, %v1269_v31 }
 0x739   :  { %v1317_v48 = vadd.f32 0.112945676, %v1316_v55  ;;  %v1342_v2 = vadd.f32 0.00028619796, %v1341_v11  ;;  %v1353_v0 = vadd.f32 0.001143296, %v1352_v59 }
 0x73a   :  { %1672 = vrcp.f32 %v1281_v15  ;;  %v1306_v1 = vadd.f32 0.05243302, %v1305_v60  ;;  %v1291_v23 = vand.u32 2147483647, %v1281_v15  ;;  %v1293_v35 = vand.u32 2147483648, %v1281_v15 }
 0x73b   :  { %v1318_v62 = vmul.f32 %v1317_v48, %v2446_v56  ;;  %v1343_v8 = vmul.f32 %v1342_v2, %v2460_v39  ;;  %v1354_v13 = vmul.f32 %v1353_v0, %v2460_v39  ;;  %vm1287_vm8 = vweird.f32 %v1281_v15 }
 0x73c   :  { %v1307_v24 = vmul.f32 %v1306_v1, %v2446_v56  ;;  %v1271_v30 = vmul.f32 %v1270_v34, %v2432_v12  ;;  %v1294_v21 = vor.u32 1.1754944e-38, %v1293_v35  ;;  %vm1292_vm10 = vcmp.eq.f32.partialorder %v1291_v23, 8.507059e+37 }
 0x73d   :  { %v1319_v6 = vadd.f32 0.4994258, %v1318_v62  ;;  %v1355_v22 = vadd.f32 0.014752088, %v1354_v13  ;;  %v1344_v17 = vadd.f32 0.0036580483, %v1343_v8 }
 0x73e   :  { %v1308_v10 = vadd.f32 0.18741608, %v1307_v24  ;;  %v1213_v1 = vmul.f32 0.5, %v2438_v33  ;;  %v1214_v34 = vmul.f32 0.5, %v2451_v44 }
 0x73f   :  { %v1320_v14 = vmul.f32 %v1319_v6, %v2446_v56  ;;  %v1356_v9 = vmul.f32 %v1355_v22, %v2460_v39  ;;  %v1345_v18 = vmul.f32 %v1344_v17, %v2460_v39 }
 0x740   :  { %v1673_v29 = vpop.eup %1672  ;;  %v1309_v36 = vmul.f32 %v1308_v10, %v2446_v56 }
 0x741   :  { %v1283_v38 = vmul.f32 %v1673_v29, %v1281_v15  ;;  %v1321_v57 = vadd.f32 1.0, %v1320_v14  ;;  %vm1288_vm7 = vweird.f32 %v1673_v29  ;;  %v1357_v19 = vadd.f32 0.112945676, %v1356_v9 }
 0x742   :  { %vm1289_vm9 = vmor %vm1287_vm8, %vm1288_vm7  ;;  %v1346_v46 = vadd.f32 0.05243302, %v1345_v18  ;;  %v1310_v45 = vadd.f32 1.1283791, %v1309_v36 }
 0x743   :  { %v1284_v32 = vsub.f32 1.0, %v1283_v38  ;;  %1674 = vrcp.f32 %v1321_v57  ;;  %v1358_v27 = vmul.f32 %v1357_v19, %v2460_v39  ;;  %v1333_v28 = vand.u32 2147483648, %v1321_v57 }
 0x744   :  { %v1347_v43 = vmul.f32 %v1346_v46, %v2460_v39  ;;  %v1331_v55 = vand.u32 2147483647, %v1321_v57  ;;  %vm1327_vm12 = vweird.f32 %v1321_v57  ;;  %v1311_v59 = vmul.f32 %v1310_v45, %v2441_v61 }
 0x745   :  { %v1285_v16 = vmul.f32 %v1673_v29, %v1284_v32  ;;  %v1359_v4 = vadd.f32 0.4994258, %v1358_v27  ;;  %v1334_v11 = vor.u32 1.1754944e-38, %v1333_v28 }
 0x746   :  { %v1348_v48 = vadd.f32 0.18741608, %v1347_v43  ;;  %vm1332_vm14 = vcmp.eq.f32.partialorder %v1331_v55, 8.507059e+37 }
 0x747   :  { %v1286_v58 = vadd.f32 %v1673_v29, %v1285_v16  ;;  %v1360_v52 = vmul.f32 %v1359_v4, %v2460_v39  ;;  %v1395_v16 = vperm.slane %v2317_v51, 3 }
 0x748   :  { %v1349_v6 = vmul.f32 %v1348_v48, %v2460_v39 }
 0x749   :  { %v1675_v41 = vpop.eup %1674  ;;  %v1290_v42 = vsel %vm1289_vm9, %v1673_v29, %v1286_v58  ;;  %v1361_v37 = vadd.f32 1.0, %v1360_v52 }
 0x74a   :  { %v1295_v5 = vsel %vm1292_vm10, %v1294_v21, %v1290_v42  ;;  %v1323_v49 = vmul.f32 %v1675_v41, %v1321_v57  ;;  %vm1328_vm11 = vweird.f32 %v1675_v41  ;;  %v1350_v29 = vadd.f32 1.1283791, %v1349_v6 }
 0x74b   :  { %v1296_v25 = vmul.f32 %v1295_v5, %v1271_v30  ;;  %1676 = vrcp.f32 %v1361_v37  ;;  %vm1329_vm13 = vmor %vm1327_vm12, %vm1328_vm11  ;;  %v1373_v31 = vand.u32 2147483648, %v1361_v37  ;;  %v1371_v61 = vand.u32 2147483647, %v1361_v37 }
 0x74c   :  { %v1324_v63 = vsub.f32 1.0, %v1323_v49  ;;  %vm1367_vm1 = vweird.f32 %v1361_v37  ;;  %v1351_v39 = vmul.f32 %v1350_v29, %v2454_v53 }
 0x74d   :  { %v1529_v12 = vclamps-f32 %v1296_v25, 1.0  ;;  %v1374_v17 = vor.u32 1.1754944e-38, %v1373_v31  ;;  %vm1372_vm4 = vcmp.eq.f32.partialorder %v1371_v61, 8.507059e+37 }
 0x74e   :  { %v1325_v54 = vmul.f32 %v1675_v41, %v1324_v63 }
 0x74f   :  { %v1380_v56 = vadd.f32 1.0, %v1529_v12 }
 0x750   :  { %v1326_v15 = vadd.f32 %v1675_v41, %v1325_v54 }
 0x751   :  { %v1384_v62 = vmul.f32 %v1380_v56, %v1212_v50  ;;  %v1677_v0 = vpop.eup %1676 }
 0x752   :  { %v1330_v60 = vsel %vm1329_vm13, %v1675_v41, %v1326_v15  ;;  %v1363_v8 = vmul.f32 %v1677_v0, %v1361_v37  ;;  %vm1368_vm15 = vweird.f32 %v1677_v0 }
 0x753   :  { %v1335_v2 = vsel %vm1332_vm14, %v1334_v11, %v1330_v60  ;;  %1533 = vmatmul.msk.f32.gmra.mxu1 %vm1007_vm3, %v1384_v62  ;;  %vm1369_vm2 = vmor %vm1367_vm1, %vm1368_vm15 }
 0x754   :  { %v1336_v47 = vmul.f32 %v1335_v2, %v1311_v59  ;;  %v1364_v13 = vsub.f32 1.0, %v1363_v8 }
 0x756   :  { %v1530_v7 = vclamps-f32 %v1336_v47, 1.0  ;;  %v1365_v22 = vmul.f32 %v1677_v0, %v1364_v13 }
 0x758   :  { %v1381_v14 = vadd.f32 1.0, %v1530_v7  ;;  %v1366_v57 = vadd.f32 %v1677_v0, %v1365_v22 }
 0x75a   :  { %v1385_v38 = vmul.f32 %v1381_v14, %v1213_v1  ;;  %v1370_v24 = vsel %vm1369_vm2, %v1677_v0, %v1366_v57 }
 0x75b   :  { %v1375_v9 = vsel %vm1372_vm4, %v1374_v17, %v1370_v24 }
 0x75c   :  { %1534 = vmatmul.msk.f32.gmra.mxu1 %vm1007_vm3, %v1385_v38  ;;  %v1376_v33 = vmul.f32 %v1375_v9, %v1351_v39 }
 0x75e   :  { %v1531_v32 = vclamps-f32 %v1376_v33, 1.0 }
 0x760   :  { %v1382_v23 = vadd.f32 1.0, %v1531_v32 }
 0x762   :  { %v1386_v35 = vmul.f32 %v1382_v23, %v1214_v34 }
 0x764   :  { %1535 = vmatmul.msk.f32.gmra.mxu1 %vm1007_vm3, %v1386_v35 }
 0x7a8   :  { %v1425_v18 = vpop.f32.mrf.mxu1 }
 0x7a9   :  { %v1426_v19 = vadd.f32 %v1425_v18, %v1395_v16 }
 0x7ab   :  { %v1437_v10 = vadd.f32 %v1426_v19, %v2323_v26 }
 0x7ad   :  { %1441 = vst.msk [vmem:[#allocation5] sm:$0xff] %vm71_vm0, %v1437_v10 }
 0x7d0   :  { %v1428_v53 = vpop.f32.mrf.mxu1 }
 0x7d1   :  { %v1429_v58 = vadd.f32 %v1428_v53, %v1395_v16 }
 0x7d3   :  { %v1438_v27 = vadd.f32 %v1429_v58, %v2330_v20 }
 0x7d5   :  { %1442 = vst.msk [vmem:[#allocation5 + $0x8] sm:$0xff] %vm71_vm0, %v1438_v27 }
 0x7d9   :  { %v1431_v30 = vpop.f32.mrf.mxu1 }
 0x7da   :  { %v1432_v44 = vadd.f32 %v1431_v30, %v1395_v16 }
 0x7dc   :  { %v1439_v21 = vadd.f32 %v1432_v44, %v2337_v40 }
 0x7de   :  { %1443 = vst.msk [vmem:[#allocation5 + $0x10] sm:$0xff] %vm71_vm0, %v1439_v21 }
 0x7e1   :  { %v1434_v51 = vpop.f32.mrf.mxu1 }
 0x7e2   :  { %v1435_v26 = vadd.f32 %v1434_v51, %v1395_v16 }
 0x7e4   :  { %v1440_v20 = vadd.f32 %v1435_v26, %v2344_v3 }
 0x7e6   :  { %1444 = vst.msk [vmem:[#allocation5 + $0x18] sm:$0xff] %vm71_vm0, %v1440_v20 }
 0x7e7   :  { %1457 = dma.vmem_to_hbm [thread:$0]  %s1450_s21, 512, %s1452_s24, [#allocation4], %s1742_s25, %s1742_s25, %s1743_s0  }
 0x7e8   :  { %1733 = dma.done.wait [#allocation4], 512  }
 0x7e9   :  { %1734 = vsyncadd [#allocation4], 4294966784 }
 0x7ea   :  { %1462 = vsyncpa [#allocation3], 1 }
 0x7eb   :  { %1463 = vsyncpa [#allocation4], 1 }

</bundles_post_ra>
